<compile_context>
chip_gen: v6e
topology: v6e:2x2x1
jax: 0.10.0
libtpu: 0.0.40
codegen_flags: <defaults>
</compile_context>

<pallas_src>
import jax
import jax.numpy as jnp
from jax import lax
from jax.experimental import pallas as pl
from jax.experimental.pallas import tpu as pltpu


# ----------------------------------------------------------------------------
# Fused kernel: LSTM encoder + masked mean pool + FC head + pos-score + AUCM loss
# ----------------------------------------------------------------------------
def learner_forward_kernel(x_ref, lens_ref, wih_ref, whh_ref, blstm_ref,
                           w1_ref, b1_ref, w2_ref, b2_ref, y_ref,
                           aucm_ref, out_ref):
    # x_ref:    (T*B, D)  time-major embeddings, flattened over (T, B)
    # lens_ref: (B, 1)    int32 sequence lengths (>= 1)
    # wih_ref:  (D, 4H)   fused input->gate weights, gate order i | f | g | o
    # whh_ref:  (H, 4H)   fused hidden->gate weights
    # blstm_ref:(1, 4H)   fused gate bias (b_ih + b_hh)
    # w1/b1/w2/b2: FC classifier head;  y_ref: (B, 1) float labels in {0, 1}
    # aucm_ref: (3,)      SMEM [a, b, alpha] AUCM parameters (zeros at __init__)
    # out_ref:  (B, 128)  packed output slab:
    #           lanes [0, C): logits, lane C: softmax[:, -1], lane C+1: loss
    TB, D = x_ref.shape
    H4 = whh_ref.shape[1]
    H = H4 // 4
    B = lens_ref.shape[0]
    T = TB // B
    C = w2_ref.shape[1]
    LANES = out_ref.shape[1]

    # ---- input projection hoisted out of the recurrence: one lane-dense MXU
    # call; kept as a value (T*B, 4H) = 8 vregs, no VMEM scratch round trip.
    xw = (jnp.dot(x_ref[...], wih_ref[...], preferred_element_type=jnp.float32)
          + blstm_ref[...])

    whh = whh_ref[...]                                           # keep resident
    lens_b = jnp.broadcast_to(lens_ref[...], (B, H))             # hoisted broadcast

    h = jnp.zeros((B, H), jnp.float32)
    c = jnp.zeros((B, H), jnp.float32)
    acc = jnp.zeros((B, H), jnp.float32)

    # Fully unrolled T-step recurrence; only h @ whh sits on the serial path.
    for t in range(T):
        gates = xw[t * B:(t + 1) * B, :] + jnp.dot(
            h, whh, preferred_element_type=jnp.float32)          # (B, 4H)

        i_g = jax.nn.sigmoid(gates[:, 0 * H:1 * H])
        f_g = jax.nn.sigmoid(gates[:, 1 * H:2 * H])
        g_g = jnp.tanh(gates[:, 2 * H:3 * H])
        o_g = jax.nn.sigmoid(gates[:, 3 * H:4 * H])

        c_new = f_g * c + i_g * g_g
        h_new = o_g * jnp.tanh(c_new)

        # freeze padded timesteps (t >= lens[b]), like packed sequences
        valid = lens_b > t                                       # (B, H) mask
        c = jnp.where(valid, c_new, c)
        h = jnp.where(valid, h_new, h)
        acc = acc + jnp.where(valid, h_new, 0.0)

    # mean pooling over valid timesteps (pool_type='mean'); hoisted reciprocal
    inv_lens = 1.0 / lens_b.astype(jnp.float32)
    pooled = acc * inv_lens                                      # (B, H)

    # ---------------------------- FC classifier head ---------------------------
    hidden = jnp.tanh(
        jnp.dot(pooled, w1_ref[...], preferred_element_type=jnp.float32)
        + b1_ref[...])
    logits = (jnp.dot(hidden, w2_ref[...], preferred_element_type=jnp.float32)
              + b2_ref[...])                                     # (B, C)

    # positive-class score; for C == 2:
    #   softmax(logits)[:, -1] == sigmoid(logits[:, 1] - logits[:, 0])
    # (no cross-lane max/sum reductions, one EUP sigmoid)
    pred = jax.nn.sigmoid(logits[:, C - 1:C] - logits[:, 0:1])   # (B, 1)

    # ------------------------------- AUCM loss ----------------------------------
    # (imratio computed per-batch from labels, matching AUCMLoss default)
    y = y_ref[...]                                               # (B, 1)
    inv_B = 1.0 / B
    p = jnp.sum(y) * inv_B
    a = aucm_ref[0]
    b = aucm_ref[1]
    alpha = aucm_ref[2]
    pos = y
    neg = 1.0 - y

    # fused elementwise term, single cross-sublane reduction
    elt = ((1.0 - p) * (pred - a) ** 2 * pos
           + p * (pred - b) ** 2 * neg
           + 2.0 * alpha * (p * pred * neg - (1.0 - p) * pred * pos))
    loss = (jnp.sum(elt) * inv_B
            + 2.0 * alpha * p * (1.0 - p)
            - p * (1.0 - p) * alpha * alpha)

    # --------------------- packed lane-dense output slab ------------------------
    # lanes [0, C): logits | lane C: pos score | lane C+1: loss | rest: 0
    col = lax.broadcasted_iota(jnp.int32, (B, LANES), 1)
    slab = jnp.zeros((B, LANES), jnp.float32)
    for i in range(C):
        slab = jnp.where(col == i, logits[:, i:i + 1], slab)
    slab = jnp.where(col == C, pred, slab)
    slab = jnp.where(col == C + 1, loss, slab)
    out_ref[...] = slab                                          # one unmasked store


# ----------------------------------------------------------------------------
# Wrapper emulating one `predict` + AUC-loss evaluation of the inner model
# ----------------------------------------------------------------------------
def learner_forward_step(s_embed, s_lens, labels, params):
    """One device-side evaluation of the Learner hot path:
       RNN encoder -> mean pool -> FC head -> (logits, softmax[:, -1], AUCMLoss)."""
    T, B, D = s_embed.shape
    C = params["w2"].shape[-1]
    assert C == 2, "sigmoid shortcut for softmax[:, -1] requires n_classes == 2"
    LANES = 128

    # free metadata reshapes in XLA
    x_flat = s_embed.reshape(T * B, D)
    lens_i32 = s_lens.astype(jnp.int32).reshape(B, 1)
    y = labels.astype(jnp.float32).reshape(B, 1)

    vmem = pl.BlockSpec(memory_space=pltpu.MemorySpace.VMEM)
    smem = pl.BlockSpec(memory_space=pltpu.MemorySpace.SMEM)

    # NOTE: f32 matmul operands kept for exact parity with the torch module at
    # these toy shapes; bf16 (with f32 accumulation) only pays off at larger D/H.
    slab = pl.pallas_call(
        learner_forward_kernel,
        out_shape=jax.ShapeDtypeStruct((B, LANES), jnp.float32),
        in_specs=[vmem] * 10 + [smem],
        out_specs=vmem,
    )(x_flat, lens_i32,
      params["wih"], params["whh"], params["b_lstm"],
      params["w1"], params["b1"], params["w2"], params["b2"],
      y, params["aucm"])

    logits = slab[:, :C]                   # (B, C)
    pos_scores = slab[:, C:C + 1]          # (B, 1)  softmax[:, -1]
    auc_loss = slab[0:1, C + 1:C + 2]      # (1, 1)  AUCM loss
    return logits, pos_scores, auc_loss


if __name__ == "__main__":
    # Small shapes consistent with the module:
    # word_embed_dim=32 (GLOVE_DIM stand-in), encoder_dim=32, fc_dim=32,
    # n_classes=2, batch=8, seq_len=8, pool_type='mean', n_enc_layers=1.
    T, B, D, H, Fdim, C = 8, 8, 32, 32, 32, 2

    key = jax.random.PRNGKey(0)
    ks = jax.random.split(key, 8)
    scale = 0.1

    s_embed = jax.random.normal(ks[0], (T, B, D), jnp.float32)          # (T, B, D)
    s_lens = jax.random.randint(ks[1], (B,), 1, T + 1).astype(jnp.int32)  # (B,)
    labels = jax.random.randint(ks[2], (B,), 0, 2).astype(jnp.float32)    # (B,)

    params = {
        # fused LSTM weights, gate order i | f | g | o along the 4H (=128) axis
        "wih": scale * jax.random.normal(ks[3], (D, 4 * H), jnp.float32),
        "whh": scale * jax.random.normal(ks[4], (H, 4 * H), jnp.float32),
        "b_lstm": jnp.zeros((1, 4 * H), jnp.float32),       # b_ih + b_hh fused
        "w1": scale * jax.random.normal(ks[5], (H, Fdim), jnp.float32),
        "b1": jnp.zeros((1, Fdim), jnp.float32),
        "w2": scale * jax.random.normal(ks[6], (Fdim, C), jnp.float32),
        "b2": jnp.zeros((1, C), jnp.float32),
        # [a, b, alpha] initialized to zeros exactly as in Learner.__init__
        "aucm": jnp.zeros((3,), jnp.float32),
    }

    logits, pos_scores, auc_loss = learner_forward_step(s_embed, s_lens, labels, params)
    jax.block_until_ready((logits, pos_scores, auc_loss))

    assert logits.shape == (B, C)
    assert pos_scores.shape == (B, 1)
    assert auc_loss.shape == (1, 1)
    print("KERNEL_OK")
</pallas_src>

<mosaic_0001>
module attributes {stable_mosaic.version = 11 : i64} {
  func.func @learner_forward_kernel(%arg0: memref<64x32xf32, #tpu.memory_space<vmem>>, %arg1: memref<8x1xi32, #tpu.memory_space<vmem>>, %arg2: memref<32x128xf32, #tpu.memory_space<vmem>>, %arg3: memref<32x128xf32, #tpu.memory_space<vmem>>, %arg4: memref<1x128xf32, #tpu.memory_space<vmem>>, %arg5: memref<32x32xf32, #tpu.memory_space<vmem>>, %arg6: memref<1x32xf32, #tpu.memory_space<vmem>>, %arg7: memref<32x2xf32, #tpu.memory_space<vmem>>, %arg8: memref<1x2xf32, #tpu.memory_space<vmem>>, %arg9: memref<8x1xf32, #tpu.memory_space<vmem>>, %arg10: memref<3xf32, #tpu.memory_space<smem>>, %arg11: memref<8x128xf32, #tpu.memory_space<vmem>>) attributes {dimension_semantics = [], scalar_prefetch = 0 : i64, scratch_operands = 0 : i64, tpu.core_type = #tpu.core_type<tc>} {
    %c0 = arith.constant 0 : index
    %c0_0 = arith.constant 0 : index
    %0 = vector.load %arg0[%c0, %c0_0] : memref<64x32xf32, #tpu.memory_space<vmem>>, vector<64x32xf32>
    %c0_1 = arith.constant 0 : index
    %c0_2 = arith.constant 0 : index
    %1 = vector.load %arg2[%c0_1, %c0_2] : memref<32x128xf32, #tpu.memory_space<vmem>>, vector<32x128xf32>
    %cst = arith.constant dense<0.000000e+00> : vector<64x128xf32>
    %2 = tpu.matmul %0, %1, %cst {dimension_numbers = #tpu.dot_dimension_numbers<[1], [0], [0], [1], [0, 0, 1, 1], [], []>} : vector<64x32xf32>, vector<32x128xf32>, vector<64x128xf32> -> vector<64x128xf32>
    %c0_3 = arith.constant 0 : index
    %c0_4 = arith.constant 0 : index
    %3 = vector.load %arg4[%c0_3, %c0_4] : memref<1x128xf32, #tpu.memory_space<vmem>>, vector<1x128xf32>
    %4 = vector.broadcast %3 : vector<1x128xf32> to vector<64x128xf32>
    %5 = arith.addf %2, %4 : vector<64x128xf32>
    %c0_5 = arith.constant 0 : index
    %c0_6 = arith.constant 0 : index
    %6 = vector.load %arg3[%c0_5, %c0_6] : memref<32x128xf32, #tpu.memory_space<vmem>>, vector<32x128xf32>
    %c0_7 = arith.constant 0 : index
    %c0_8 = arith.constant 0 : index
    %7 = vector.load %arg1[%c0_7, %c0_8] : memref<8x1xi32, #tpu.memory_space<vmem>>, vector<8x1xi32>
    %8 = vector.shape_cast %7 : vector<8x1xi32> to vector<8x1xi32>
    %9 = vector.broadcast %8 : vector<8x1xi32> to vector<8x32xi32>
    %cst_9 = arith.constant 0.000000e+00 : f32
    %10 = vector.broadcast %cst_9 : f32 to vector<8x32xf32>
    %cst_10 = arith.constant 0.000000e+00 : f32
    %11 = vector.broadcast %cst_10 : f32 to vector<8x32xf32>
    %cst_11 = arith.constant 0.000000e+00 : f32
    %12 = vector.broadcast %cst_11 : f32 to vector<8x32xf32>
    %13 = vector.extract_strided_slice %5 {offsets = [0, 0], sizes = [8, 128], strides = [1, 1]} : vector<64x128xf32> to vector<8x128xf32>
    %cst_12 = arith.constant dense<0.000000e+00> : vector<8x128xf32>
    %14 = tpu.matmul %10, %6, %cst_12 {dimension_numbers = #tpu.dot_dimension_numbers<[1], [0], [0], [1], [0, 0, 1, 1], [], []>} : vector<8x32xf32>, vector<32x128xf32>, vector<8x128xf32> -> vector<8x128xf32>
    %15 = arith.addf %13, %14 : vector<8x128xf32>
    %16 = vector.extract_strided_slice %15 {offsets = [0, 0], sizes = [8, 32], strides = [1, 1]} : vector<8x128xf32> to vector<8x32xf32>
    %17 = arith.negf %16 : vector<8x32xf32>
    %18 = math.exp %17 : vector<8x32xf32>
    %cst_13 = arith.constant 1.000000e+00 : f32
    %19 = vector.broadcast %cst_13 : f32 to vector<8x32xf32>
    %20 = arith.addf %19, %18 : vector<8x32xf32>
    %21 = arith.divf %19, %20 : vector<8x32xf32>
    %22 = vector.extract_strided_slice %15 {offsets = [0, 32], sizes = [8, 32], strides = [1, 1]} : vector<8x128xf32> to vector<8x32xf32>
    %23 = arith.negf %22 : vector<8x32xf32>
    %24 = math.exp %23 : vector<8x32xf32>
    %cst_14 = arith.constant 1.000000e+00 : f32
    %25 = vector.broadcast %cst_14 : f32 to vector<8x32xf32>
    %26 = arith.addf %25, %24 : vector<8x32xf32>
    %27 = arith.divf %25, %26 : vector<8x32xf32>
    %28 = vector.extract_strided_slice %15 {offsets = [0, 64], sizes = [8, 32], strides = [1, 1]} : vector<8x128xf32> to vector<8x32xf32>
    %29 = math.tanh %28 : vector<8x32xf32>
    %30 = vector.extract_strided_slice %15 {offsets = [0, 96], sizes = [8, 32], strides = [1, 1]} : vector<8x128xf32> to vector<8x32xf32>
    %31 = arith.negf %30 : vector<8x32xf32>
    %32 = math.exp %31 : vector<8x32xf32>
    %cst_15 = arith.constant 1.000000e+00 : f32
    %33 = vector.broadcast %cst_15 : f32 to vector<8x32xf32>
    %34 = arith.addf %33, %32 : vector<8x32xf32>
    %35 = arith.divf %33, %34 : vector<8x32xf32>
    %36 = arith.mulf %27, %11 : vector<8x32xf32>
    %37 = arith.mulf %21, %29 : vector<8x32xf32>
    %38 = arith.addf %36, %37 : vector<8x32xf32>
    %39 = math.tanh %38 : vector<8x32xf32>
    %40 = arith.mulf %35, %39 : vector<8x32xf32>
    %c0_i32 = arith.constant 0 : i32
    %41 = vector.broadcast %c0_i32 : i32 to vector<8x32xi32>
    %42 = arith.cmpi sgt, %9, %41 : vector<8x32xi32>
    %43 = arith.select %42, %38, %11 : vector<8x32xi1>, vector<8x32xf32>
    %44 = arith.select %42, %40, %10 : vector<8x32xi1>, vector<8x32xf32>
    %cst_16 = arith.constant 0.000000e+00 : f32
    %45 = vector.broadcast %cst_16 : f32 to vector<8x32xf32>
    %46 = arith.select %42, %40, %45 : vector<8x32xi1>, vector<8x32xf32>
    %47 = arith.addf %12, %46 : vector<8x32xf32>
    %48 = vector.extract_strided_slice %5 {offsets = [8, 0], sizes = [8, 128], strides = [1, 1]} : vector<64x128xf32> to vector<8x128xf32>
    %cst_17 = arith.constant dense<0.000000e+00> : vector<8x128xf32>
    %49 = tpu.matmul %44, %6, %cst_17 {dimension_numbers = #tpu.dot_dimension_numbers<[1], [0], [0], [1], [0, 0, 1, 1], [], []>} : vector<8x32xf32>, vector<32x128xf32>, vector<8x128xf32> -> vector<8x128xf32>
    %50 = arith.addf %48, %49 : vector<8x128xf32>
    %51 = vector.extract_strided_slice %50 {offsets = [0, 0], sizes = [8, 32], strides = [1, 1]} : vector<8x128xf32> to vector<8x32xf32>
    %52 = arith.negf %51 : vector<8x32xf32>
    %53 = math.exp %52 : vector<8x32xf32>
    %cst_18 = arith.constant 1.000000e+00 : f32
    %54 = vector.broadcast %cst_18 : f32 to vector<8x32xf32>
    %55 = arith.addf %54, %53 : vector<8x32xf32>
    %56 = arith.divf %54, %55 : vector<8x32xf32>
    %57 = vector.extract_strided_slice %50 {offsets = [0, 32], sizes = [8, 32], strides = [1, 1]} : vector<8x128xf32> to vector<8x32xf32>
    %58 = arith.negf %57 : vector<8x32xf32>
    %59 = math.exp %58 : vector<8x32xf32>
    %cst_19 = arith.constant 1.000000e+00 : f32
    %60 = vector.broadcast %cst_19 : f32 to vector<8x32xf32>
    %61 = arith.addf %60, %59 : vector<8x32xf32>
    %62 = arith.divf %60, %61 : vector<8x32xf32>
    %63 = vector.extract_strided_slice %50 {offsets = [0, 64], sizes = [8, 32], strides = [1, 1]} : vector<8x128xf32> to vector<8x32xf32>
    %64 = math.tanh %63 : vector<8x32xf32>
    %65 = vector.extract_strided_slice %50 {offsets = [0, 96], sizes = [8, 32], strides = [1, 1]} : vector<8x128xf32> to vector<8x32xf32>
    %66 = arith.negf %65 : vector<8x32xf32>
    %67 = math.exp %66 : vector<8x32xf32>
    %cst_20 = arith.constant 1.000000e+00 : f32
    %68 = vector.broadcast %cst_20 : f32 to vector<8x32xf32>
    %69 = arith.addf %68, %67 : vector<8x32xf32>
    %70 = arith.divf %68, %69 : vector<8x32xf32>
    %71 = arith.mulf %62, %43 : vector<8x32xf32>
    %72 = arith.mulf %56, %64 : vector<8x32xf32>
    %73 = arith.addf %71, %72 : vector<8x32xf32>
    %74 = math.tanh %73 : vector<8x32xf32>
    %75 = arith.mulf %70, %74 : vector<8x32xf32>
    %c1_i32 = arith.constant 1 : i32
    %76 = vector.broadcast %c1_i32 : i32 to vector<8x32xi32>
    %77 = arith.cmpi sgt, %9, %76 : vector<8x32xi32>
    %78 = arith.select %77, %73, %43 : vector<8x32xi1>, vector<8x32xf32>
    %79 = arith.select %77, %75, %44 : vector<8x32xi1>, vector<8x32xf32>
    %cst_21 = arith.constant 0.000000e+00 : f32
    %80 = vector.broadcast %cst_21 : f32 to vector<8x32xf32>
    %81 = arith.select %77, %75, %80 : vector<8x32xi1>, vector<8x32xf32>
    %82 = arith.addf %47, %81 : vector<8x32xf32>
    %83 = vector.extract_strided_slice %5 {offsets = [16, 0], sizes = [8, 128], strides = [1, 1]} : vector<64x128xf32> to vector<8x128xf32>
    %cst_22 = arith.constant dense<0.000000e+00> : vector<8x128xf32>
    %84 = tpu.matmul %79, %6, %cst_22 {dimension_numbers = #tpu.dot_dimension_numbers<[1], [0], [0], [1], [0, 0, 1, 1], [], []>} : vector<8x32xf32>, vector<32x128xf32>, vector<8x128xf32> -> vector<8x128xf32>
    %85 = arith.addf %83, %84 : vector<8x128xf32>
    %86 = vector.extract_strided_slice %85 {offsets = [0, 0], sizes = [8, 32], strides = [1, 1]} : vector<8x128xf32> to vector<8x32xf32>
    %87 = arith.negf %86 : vector<8x32xf32>
    %88 = math.exp %87 : vector<8x32xf32>
    %cst_23 = arith.constant 1.000000e+00 : f32
    %89 = vector.broadcast %cst_23 : f32 to vector<8x32xf32>
    %90 = arith.addf %89, %88 : vector<8x32xf32>
    %91 = arith.divf %89, %90 : vector<8x32xf32>
    %92 = vector.extract_strided_slice %85 {offsets = [0, 32], sizes = [8, 32], strides = [1, 1]} : vector<8x128xf32> to vector<8x32xf32>
    %93 = arith.negf %92 : vector<8x32xf32>
    %94 = math.exp %93 : vector<8x32xf32>
    %cst_24 = arith.constant 1.000000e+00 : f32
    %95 = vector.broadcast %cst_24 : f32 to vector<8x32xf32>
    %96 = arith.addf %95, %94 : vector<8x32xf32>
    %97 = arith.divf %95, %96 : vector<8x32xf32>
    %98 = vector.extract_strided_slice %85 {offsets = [0, 64], sizes = [8, 32], strides = [1, 1]} : vector<8x128xf32> to vector<8x32xf32>
    %99 = math.tanh %98 : vector<8x32xf32>
    %100 = vector.extract_strided_slice %85 {offsets = [0, 96], sizes = [8, 32], strides = [1, 1]} : vector<8x128xf32> to vector<8x32xf32>
    %101 = arith.negf %100 : vector<8x32xf32>
    %102 = math.exp %101 : vector<8x32xf32>
    %cst_25 = arith.constant 1.000000e+00 : f32
    %103 = vector.broadcast %cst_25 : f32 to vector<8x32xf32>
    %104 = arith.addf %103, %102 : vector<8x32xf32>
    %105 = arith.divf %103, %104 : vector<8x32xf32>
    %106 = arith.mulf %97, %78 : vector<8x32xf32>
    %107 = arith.mulf %91, %99 : vector<8x32xf32>
    %108 = arith.addf %106, %107 : vector<8x32xf32>
    %109 = math.tanh %108 : vector<8x32xf32>
    %110 = arith.mulf %105, %109 : vector<8x32xf32>
    %c2_i32 = arith.constant 2 : i32
    %111 = vector.broadcast %c2_i32 : i32 to vector<8x32xi32>
    %112 = arith.cmpi sgt, %9, %111 : vector<8x32xi32>
    %113 = arith.select %112, %108, %78 : vector<8x32xi1>, vector<8x32xf32>
    %114 = arith.select %112, %110, %79 : vector<8x32xi1>, vector<8x32xf32>
    %cst_26 = arith.constant 0.000000e+00 : f32
    %115 = vector.broadcast %cst_26 : f32 to vector<8x32xf32>
    %116 = arith.select %112, %110, %115 : vector<8x32xi1>, vector<8x32xf32>
    %117 = arith.addf %82, %116 : vector<8x32xf32>
    %118 = vector.extract_strided_slice %5 {offsets = [24, 0], sizes = [8, 128], strides = [1, 1]} : vector<64x128xf32> to vector<8x128xf32>
    %cst_27 = arith.constant dense<0.000000e+00> : vector<8x128xf32>
    %119 = tpu.matmul %114, %6, %cst_27 {dimension_numbers = #tpu.dot_dimension_numbers<[1], [0], [0], [1], [0, 0, 1, 1], [], []>} : vector<8x32xf32>, vector<32x128xf32>, vector<8x128xf32> -> vector<8x128xf32>
    %120 = arith.addf %118, %119 : vector<8x128xf32>
    %121 = vector.extract_strided_slice %120 {offsets = [0, 0], sizes = [8, 32], strides = [1, 1]} : vector<8x128xf32> to vector<8x32xf32>
    %122 = arith.negf %121 : vector<8x32xf32>
    %123 = math.exp %122 : vector<8x32xf32>
    %cst_28 = arith.constant 1.000000e+00 : f32
    %124 = vector.broadcast %cst_28 : f32 to vector<8x32xf32>
    %125 = arith.addf %124, %123 : vector<8x32xf32>
    %126 = arith.divf %124, %125 : vector<8x32xf32>
    %127 = vector.extract_strided_slice %120 {offsets = [0, 32], sizes = [8, 32], strides = [1, 1]} : vector<8x128xf32> to vector<8x32xf32>
    %128 = arith.negf %127 : vector<8x32xf32>
    %129 = math.exp %128 : vector<8x32xf32>
    %cst_29 = arith.constant 1.000000e+00 : f32
    %130 = vector.broadcast %cst_29 : f32 to vector<8x32xf32>
    %131 = arith.addf %130, %129 : vector<8x32xf32>
    %132 = arith.divf %130, %131 : vector<8x32xf32>
    %133 = vector.extract_strided_slice %120 {offsets = [0, 64], sizes = [8, 32], strides = [1, 1]} : vector<8x128xf32> to vector<8x32xf32>
    %134 = math.tanh %133 : vector<8x32xf32>
    %135 = vector.extract_strided_slice %120 {offsets = [0, 96], sizes = [8, 32], strides = [1, 1]} : vector<8x128xf32> to vector<8x32xf32>
    %136 = arith.negf %135 : vector<8x32xf32>
    %137 = math.exp %136 : vector<8x32xf32>
    %cst_30 = arith.constant 1.000000e+00 : f32
    %138 = vector.broadcast %cst_30 : f32 to vector<8x32xf32>
    %139 = arith.addf %138, %137 : vector<8x32xf32>
    %140 = arith.divf %138, %139 : vector<8x32xf32>
    %141 = arith.mulf %132, %113 : vector<8x32xf32>
    %142 = arith.mulf %126, %134 : vector<8x32xf32>
    %143 = arith.addf %141, %142 : vector<8x32xf32>
    %144 = math.tanh %143 : vector<8x32xf32>
    %145 = arith.mulf %140, %144 : vector<8x32xf32>
    %c3_i32 = arith.constant 3 : i32
    %146 = vector.broadcast %c3_i32 : i32 to vector<8x32xi32>
    %147 = arith.cmpi sgt, %9, %146 : vector<8x32xi32>
    %148 = arith.select %147, %143, %113 : vector<8x32xi1>, vector<8x32xf32>
    %149 = arith.select %147, %145, %114 : vector<8x32xi1>, vector<8x32xf32>
    %cst_31 = arith.constant 0.000000e+00 : f32
    %150 = vector.broadcast %cst_31 : f32 to vector<8x32xf32>
    %151 = arith.select %147, %145, %150 : vector<8x32xi1>, vector<8x32xf32>
    %152 = arith.addf %117, %151 : vector<8x32xf32>
    %153 = vector.extract_strided_slice %5 {offsets = [32, 0], sizes = [8, 128], strides = [1, 1]} : vector<64x128xf32> to vector<8x128xf32>
    %cst_32 = arith.constant dense<0.000000e+00> : vector<8x128xf32>
    %154 = tpu.matmul %149, %6, %cst_32 {dimension_numbers = #tpu.dot_dimension_numbers<[1], [0], [0], [1], [0, 0, 1, 1], [], []>} : vector<8x32xf32>, vector<32x128xf32>, vector<8x128xf32> -> vector<8x128xf32>
    %155 = arith.addf %153, %154 : vector<8x128xf32>
    %156 = vector.extract_strided_slice %155 {offsets = [0, 0], sizes = [8, 32], strides = [1, 1]} : vector<8x128xf32> to vector<8x32xf32>
    %157 = arith.negf %156 : vector<8x32xf32>
    %158 = math.exp %157 : vector<8x32xf32>
    %cst_33 = arith.constant 1.000000e+00 : f32
    %159 = vector.broadcast %cst_33 : f32 to vector<8x32xf32>
    %160 = arith.addf %159, %158 : vector<8x32xf32>
    %161 = arith.divf %159, %160 : vector<8x32xf32>
    %162 = vector.extract_strided_slice %155 {offsets = [0, 32], sizes = [8, 32], strides = [1, 1]} : vector<8x128xf32> to vector<8x32xf32>
    %163 = arith.negf %162 : vector<8x32xf32>
    %164 = math.exp %163 : vector<8x32xf32>
    %cst_34 = arith.constant 1.000000e+00 : f32
    %165 = vector.broadcast %cst_34 : f32 to vector<8x32xf32>
    %166 = arith.addf %165, %164 : vector<8x32xf32>
    %167 = arith.divf %165, %166 : vector<8x32xf32>
    %168 = vector.extract_strided_slice %155 {offsets = [0, 64], sizes = [8, 32], strides = [1, 1]} : vector<8x128xf32> to vector<8x32xf32>
    %169 = math.tanh %168 : vector<8x32xf32>
    %170 = vector.extract_strided_slice %155 {offsets = [0, 96], sizes = [8, 32], strides = [1, 1]} : vector<8x128xf32> to vector<8x32xf32>
    %171 = arith.negf %170 : vector<8x32xf32>
    %172 = math.exp %171 : vector<8x32xf32>
    %cst_35 = arith.constant 1.000000e+00 : f32
    %173 = vector.broadcast %cst_35 : f32 to vector<8x32xf32>
    %174 = arith.addf %173, %172 : vector<8x32xf32>
    %175 = arith.divf %173, %174 : vector<8x32xf32>
    %176 = arith.mulf %167, %148 : vector<8x32xf32>
    %177 = arith.mulf %161, %169 : vector<8x32xf32>
    %178 = arith.addf %176, %177 : vector<8x32xf32>
    %179 = math.tanh %178 : vector<8x32xf32>
    %180 = arith.mulf %175, %179 : vector<8x32xf32>
    %c4_i32 = arith.constant 4 : i32
    %181 = vector.broadcast %c4_i32 : i32 to vector<8x32xi32>
    %182 = arith.cmpi sgt, %9, %181 : vector<8x32xi32>
    %183 = arith.select %182, %178, %148 : vector<8x32xi1>, vector<8x32xf32>
    %184 = arith.select %182, %180, %149 : vector<8x32xi1>, vector<8x32xf32>
    %cst_36 = arith.constant 0.000000e+00 : f32
    %185 = vector.broadcast %cst_36 : f32 to vector<8x32xf32>
    %186 = arith.select %182, %180, %185 : vector<8x32xi1>, vector<8x32xf32>
    %187 = arith.addf %152, %186 : vector<8x32xf32>
    %188 = vector.extract_strided_slice %5 {offsets = [40, 0], sizes = [8, 128], strides = [1, 1]} : vector<64x128xf32> to vector<8x128xf32>
    %cst_37 = arith.constant dense<0.000000e+00> : vector<8x128xf32>
    %189 = tpu.matmul %184, %6, %cst_37 {dimension_numbers = #tpu.dot_dimension_numbers<[1], [0], [0], [1], [0, 0, 1, 1], [], []>} : vector<8x32xf32>, vector<32x128xf32>, vector<8x128xf32> -> vector<8x128xf32>
    %190 = arith.addf %188, %189 : vector<8x128xf32>
    %191 = vector.extract_strided_slice %190 {offsets = [0, 0], sizes = [8, 32], strides = [1, 1]} : vector<8x128xf32> to vector<8x32xf32>
    %192 = arith.negf %191 : vector<8x32xf32>
    %193 = math.exp %192 : vector<8x32xf32>
    %cst_38 = arith.constant 1.000000e+00 : f32
    %194 = vector.broadcast %cst_38 : f32 to vector<8x32xf32>
    %195 = arith.addf %194, %193 : vector<8x32xf32>
    %196 = arith.divf %194, %195 : vector<8x32xf32>
    %197 = vector.extract_strided_slice %190 {offsets = [0, 32], sizes = [8, 32], strides = [1, 1]} : vector<8x128xf32> to vector<8x32xf32>
    %198 = arith.negf %197 : vector<8x32xf32>
    %199 = math.exp %198 : vector<8x32xf32>
    %cst_39 = arith.constant 1.000000e+00 : f32
    %200 = vector.broadcast %cst_39 : f32 to vector<8x32xf32>
    %201 = arith.addf %200, %199 : vector<8x32xf32>
    %202 = arith.divf %200, %201 : vector<8x32xf32>
    %203 = vector.extract_strided_slice %190 {offsets = [0, 64], sizes = [8, 32], strides = [1, 1]} : vector<8x128xf32> to vector<8x32xf32>
    %204 = math.tanh %203 : vector<8x32xf32>
    %205 = vector.extract_strided_slice %190 {offsets = [0, 96], sizes = [8, 32], strides = [1, 1]} : vector<8x128xf32> to vector<8x32xf32>
    %206 = arith.negf %205 : vector<8x32xf32>
    %207 = math.exp %206 : vector<8x32xf32>
    %cst_40 = arith.constant 1.000000e+00 : f32
    %208 = vector.broadcast %cst_40 : f32 to vector<8x32xf32>
    %209 = arith.addf %208, %207 : vector<8x32xf32>
    %210 = arith.divf %208, %209 : vector<8x32xf32>
    %211 = arith.mulf %202, %183 : vector<8x32xf32>
    %212 = arith.mulf %196, %204 : vector<8x32xf32>
    %213 = arith.addf %211, %212 : vector<8x32xf32>
    %214 = math.tanh %213 : vector<8x32xf32>
    %215 = arith.mulf %210, %214 : vector<8x32xf32>
    %c5_i32 = arith.constant 5 : i32
    %216 = vector.broadcast %c5_i32 : i32 to vector<8x32xi32>
    %217 = arith.cmpi sgt, %9, %216 : vector<8x32xi32>
    %218 = arith.select %217, %213, %183 : vector<8x32xi1>, vector<8x32xf32>
    %219 = arith.select %217, %215, %184 : vector<8x32xi1>, vector<8x32xf32>
    %cst_41 = arith.constant 0.000000e+00 : f32
    %220 = vector.broadcast %cst_41 : f32 to vector<8x32xf32>
    %221 = arith.select %217, %215, %220 : vector<8x32xi1>, vector<8x32xf32>
    %222 = arith.addf %187, %221 : vector<8x32xf32>
    %223 = vector.extract_strided_slice %5 {offsets = [48, 0], sizes = [8, 128], strides = [1, 1]} : vector<64x128xf32> to vector<8x128xf32>
    %cst_42 = arith.constant dense<0.000000e+00> : vector<8x128xf32>
    %224 = tpu.matmul %219, %6, %cst_42 {dimension_numbers = #tpu.dot_dimension_numbers<[1], [0], [0], [1], [0, 0, 1, 1], [], []>} : vector<8x32xf32>, vector<32x128xf32>, vector<8x128xf32> -> vector<8x128xf32>
    %225 = arith.addf %223, %224 : vector<8x128xf32>
    %226 = vector.extract_strided_slice %225 {offsets = [0, 0], sizes = [8, 32], strides = [1, 1]} : vector<8x128xf32> to vector<8x32xf32>
    %227 = arith.negf %226 : vector<8x32xf32>
    %228 = math.exp %227 : vector<8x32xf32>
    %cst_43 = arith.constant 1.000000e+00 : f32
    %229 = vector.broadcast %cst_43 : f32 to vector<8x32xf32>
    %230 = arith.addf %229, %228 : vector<8x32xf32>
    %231 = arith.divf %229, %230 : vector<8x32xf32>
    %232 = vector.extract_strided_slice %225 {offsets = [0, 32], sizes = [8, 32], strides = [1, 1]} : vector<8x128xf32> to vector<8x32xf32>
    %233 = arith.negf %232 : vector<8x32xf32>
    %234 = math.exp %233 : vector<8x32xf32>
    %cst_44 = arith.constant 1.000000e+00 : f32
    %235 = vector.broadcast %cst_44 : f32 to vector<8x32xf32>
    %236 = arith.addf %235, %234 : vector<8x32xf32>
    %237 = arith.divf %235, %236 : vector<8x32xf32>
    %238 = vector.extract_strided_slice %225 {offsets = [0, 64], sizes = [8, 32], strides = [1, 1]} : vector<8x128xf32> to vector<8x32xf32>
    %239 = math.tanh %238 : vector<8x32xf32>
    %240 = vector.extract_strided_slice %225 {offsets = [0, 96], sizes = [8, 32], strides = [1, 1]} : vector<8x128xf32> to vector<8x32xf32>
    %241 = arith.negf %240 : vector<8x32xf32>
    %242 = math.exp %241 : vector<8x32xf32>
    %cst_45 = arith.constant 1.000000e+00 : f32
    %243 = vector.broadcast %cst_45 : f32 to vector<8x32xf32>
    %244 = arith.addf %243, %242 : vector<8x32xf32>
    %245 = arith.divf %243, %244 : vector<8x32xf32>
    %246 = arith.mulf %237, %218 : vector<8x32xf32>
    %247 = arith.mulf %231, %239 : vector<8x32xf32>
    %248 = arith.addf %246, %247 : vector<8x32xf32>
    %249 = math.tanh %248 : vector<8x32xf32>
    %250 = arith.mulf %245, %249 : vector<8x32xf32>
    %c6_i32 = arith.constant 6 : i32
    %251 = vector.broadcast %c6_i32 : i32 to vector<8x32xi32>
    %252 = arith.cmpi sgt, %9, %251 : vector<8x32xi32>
    %253 = arith.select %252, %248, %218 : vector<8x32xi1>, vector<8x32xf32>
    %254 = arith.select %252, %250, %219 : vector<8x32xi1>, vector<8x32xf32>
    %cst_46 = arith.constant 0.000000e+00 : f32
    %255 = vector.broadcast %cst_46 : f32 to vector<8x32xf32>
    %256 = arith.select %252, %250, %255 : vector<8x32xi1>, vector<8x32xf32>
    %257 = arith.addf %222, %256 : vector<8x32xf32>
    %258 = vector.extract_strided_slice %5 {offsets = [56, 0], sizes = [8, 128], strides = [1, 1]} : vector<64x128xf32> to vector<8x128xf32>
    %cst_47 = arith.constant dense<0.000000e+00> : vector<8x128xf32>
    %259 = tpu.matmul %254, %6, %cst_47 {dimension_numbers = #tpu.dot_dimension_numbers<[1], [0], [0], [1], [0, 0, 1, 1], [], []>} : vector<8x32xf32>, vector<32x128xf32>, vector<8x128xf32> -> vector<8x128xf32>
    %260 = arith.addf %258, %259 : vector<8x128xf32>
    %261 = vector.extract_strided_slice %260 {offsets = [0, 0], sizes = [8, 32], strides = [1, 1]} : vector<8x128xf32> to vector<8x32xf32>
    %262 = arith.negf %261 : vector<8x32xf32>
    %263 = math.exp %262 : vector<8x32xf32>
    %cst_48 = arith.constant 1.000000e+00 : f32
    %264 = vector.broadcast %cst_48 : f32 to vector<8x32xf32>
    %265 = arith.addf %264, %263 : vector<8x32xf32>
    %266 = arith.divf %264, %265 : vector<8x32xf32>
    %267 = vector.extract_strided_slice %260 {offsets = [0, 32], sizes = [8, 32], strides = [1, 1]} : vector<8x128xf32> to vector<8x32xf32>
    %268 = arith.negf %267 : vector<8x32xf32>
    %269 = math.exp %268 : vector<8x32xf32>
    %cst_49 = arith.constant 1.000000e+00 : f32
    %270 = vector.broadcast %cst_49 : f32 to vector<8x32xf32>
    %271 = arith.addf %270, %269 : vector<8x32xf32>
    %272 = arith.divf %270, %271 : vector<8x32xf32>
    %273 = vector.extract_strided_slice %260 {offsets = [0, 64], sizes = [8, 32], strides = [1, 1]} : vector<8x128xf32> to vector<8x32xf32>
    %274 = math.tanh %273 : vector<8x32xf32>
    %275 = vector.extract_strided_slice %260 {offsets = [0, 96], sizes = [8, 32], strides = [1, 1]} : vector<8x128xf32> to vector<8x32xf32>
    %276 = arith.negf %275 : vector<8x32xf32>
    %277 = math.exp %276 : vector<8x32xf32>
    %cst_50 = arith.constant 1.000000e+00 : f32
    %278 = vector.broadcast %cst_50 : f32 to vector<8x32xf32>
    %279 = arith.addf %278, %277 : vector<8x32xf32>
    %280 = arith.divf %278, %279 : vector<8x32xf32>
    %281 = arith.mulf %272, %253 : vector<8x32xf32>
    %282 = arith.mulf %266, %274 : vector<8x32xf32>
    %283 = arith.addf %281, %282 : vector<8x32xf32>
    %284 = math.tanh %283 : vector<8x32xf32>
    %285 = arith.mulf %280, %284 : vector<8x32xf32>
    %c7_i32 = arith.constant 7 : i32
    %286 = vector.broadcast %c7_i32 : i32 to vector<8x32xi32>
    %287 = arith.cmpi sgt, %9, %286 : vector<8x32xi32>
    %cst_51 = arith.constant 0.000000e+00 : f32
    %288 = vector.broadcast %cst_51 : f32 to vector<8x32xf32>
    %289 = arith.select %287, %285, %288 : vector<8x32xi1>, vector<8x32xf32>
    %290 = arith.addf %257, %289 : vector<8x32xf32>
    %291 = arith.sitofp %9 : vector<8x32xi32> to vector<8x32xf32>
    %cst_52 = arith.constant 1.000000e+00 : f32
    %292 = vector.broadcast %cst_52 : f32 to vector<8x32xf32>
    %293 = arith.divf %292, %291 : vector<8x32xf32>
    %294 = arith.mulf %290, %293 : vector<8x32xf32>
    %c0_53 = arith.constant 0 : index
    %c0_54 = arith.constant 0 : index
    %295 = vector.load %arg5[%c0_53, %c0_54] : memref<32x32xf32, #tpu.memory_space<vmem>>, vector<32x32xf32>
    %cst_55 = arith.constant dense<0.000000e+00> : vector<8x32xf32>
    %296 = tpu.matmul %294, %295, %cst_55 {dimension_numbers = #tpu.dot_dimension_numbers<[1], [0], [0], [1], [0, 0, 1, 1], [], []>} : vector<8x32xf32>, vector<32x32xf32>, vector<8x32xf32> -> vector<8x32xf32>
    %c0_56 = arith.constant 0 : index
    %c0_57 = arith.constant 0 : index
    %297 = vector.load %arg6[%c0_56, %c0_57] : memref<1x32xf32, #tpu.memory_space<vmem>>, vector<1x32xf32>
    %298 = vector.broadcast %297 : vector<1x32xf32> to vector<8x32xf32>
    %299 = arith.addf %296, %298 : vector<8x32xf32>
    %300 = math.tanh %299 : vector<8x32xf32>
    %c0_58 = arith.constant 0 : index
    %c0_59 = arith.constant 0 : index
    %301 = vector.load %arg7[%c0_58, %c0_59] : memref<32x2xf32, #tpu.memory_space<vmem>>, vector<32x2xf32>
    %cst_60 = arith.constant dense<0.000000e+00> : vector<8x2xf32>
    %302 = tpu.matmul %300, %301, %cst_60 {dimension_numbers = #tpu.dot_dimension_numbers<[1], [0], [0], [1], [0, 0, 1, 1], [], []>} : vector<8x32xf32>, vector<32x2xf32>, vector<8x2xf32> -> vector<8x2xf32>
    %c0_61 = arith.constant 0 : index
    %c0_62 = arith.constant 0 : index
    %303 = vector.load %arg8[%c0_61, %c0_62] : memref<1x2xf32, #tpu.memory_space<vmem>>, vector<1x2xf32>
    %304 = vector.broadcast %303 : vector<1x2xf32> to vector<8x2xf32>
    %305 = arith.addf %302, %304 : vector<8x2xf32>
    %306 = vector.extract_strided_slice %305 {offsets = [0, 1], sizes = [8, 1], strides = [1, 1]} : vector<8x2xf32> to vector<8x1xf32>
    %307 = vector.extract_strided_slice %305 {offsets = [0, 0], sizes = [8, 1], strides = [1, 1]} : vector<8x2xf32> to vector<8x1xf32>
    %308 = arith.subf %306, %307 : vector<8x1xf32>
    %309 = arith.negf %308 : vector<8x1xf32>
    %310 = math.exp %309 : vector<8x1xf32>
    %cst_63 = arith.constant 1.000000e+00 : f32
    %311 = vector.broadcast %cst_63 : f32 to vector<8x1xf32>
    %312 = arith.addf %311, %310 : vector<8x1xf32>
    %313 = arith.divf %311, %312 : vector<8x1xf32>
    %c0_64 = arith.constant 0 : index
    %c0_65 = arith.constant 0 : index
    %314 = vector.load %arg9[%c0_64, %c0_65] : memref<8x1xf32, #tpu.memory_space<vmem>>, vector<8x1xf32>
    %315 = vector.shape_cast %314 : vector<8x1xf32> to vector<1x8x1xf32>
    %cst_66 = arith.constant dense<0.000000e+00> : vector<1xf32>
    %316 = vector.multi_reduction <add>, %315, %cst_66 [1, 2] : vector<1x8x1xf32> to vector<1xf32>
    %317 = vector.shape_cast %316 : vector<1xf32> to vector<1x1x1xf32>
    %318 = vector.extract %317[0, 0, 0] : f32 from vector<1x1x1xf32>
    %cst_67 = arith.constant 1.250000e-01 : f32
    %319 = arith.mulf %318, %cst_67 : f32
    %c0_68 = arith.constant 0 : index
    %320 = memref.load %arg10[%c0_68] : memref<3xf32, #tpu.memory_space<smem>>
    %c1 = arith.constant 1 : index
    %321 = memref.load %arg10[%c1] : memref<3xf32, #tpu.memory_space<smem>>
    %c2 = arith.constant 2 : index
    %322 = memref.load %arg10[%c2] : memref<3xf32, #tpu.memory_space<smem>>
    %cst_69 = arith.constant 1.000000e+00 : f32
    %323 = vector.broadcast %cst_69 : f32 to vector<8x1xf32>
    %324 = arith.subf %323, %314 : vector<8x1xf32>
    %cst_70 = arith.constant 1.000000e+00 : f32
    %325 = arith.subf %cst_70, %319 : f32
    %326 = vector.broadcast %320 : f32 to vector<8x1xf32>
    %327 = arith.subf %313, %326 : vector<8x1xf32>
    %328 = arith.mulf %327, %327 : vector<8x1xf32>
    %329 = vector.broadcast %325 : f32 to vector<8x1xf32>
    %330 = arith.mulf %329, %328 : vector<8x1xf32>
    %331 = arith.mulf %330, %314 : vector<8x1xf32>
    %332 = vector.broadcast %321 : f32 to vector<8x1xf32>
    %333 = arith.subf %313, %332 : vector<8x1xf32>
    %334 = arith.mulf %333, %333 : vector<8x1xf32>
    %335 = vector.broadcast %319 : f32 to vector<8x1xf32>
    %336 = arith.mulf %335, %334 : vector<8x1xf32>
    %337 = arith.mulf %336, %324 : vector<8x1xf32>
    %338 = arith.addf %331, %337 : vector<8x1xf32>
    %cst_71 = arith.constant 2.000000e+00 : f32
    %339 = arith.mulf %cst_71, %322 : f32
    %340 = vector.broadcast %319 : f32 to vector<8x1xf32>
    %341 = arith.mulf %340, %313 : vector<8x1xf32>
    %342 = arith.mulf %341, %324 : vector<8x1xf32>
    %cst_72 = arith.constant 1.000000e+00 : f32
    %343 = arith.subf %cst_72, %319 : f32
    %344 = vector.broadcast %343 : f32 to vector<8x1xf32>
    %345 = arith.mulf %344, %313 : vector<8x1xf32>
    %346 = arith.mulf %345, %314 : vector<8x1xf32>
    %347 = arith.subf %342, %346 : vector<8x1xf32>
    %348 = vector.broadcast %339 : f32 to vector<8x1xf32>
    %349 = arith.mulf %348, %347 : vector<8x1xf32>
    %350 = arith.addf %338, %349 : vector<8x1xf32>
    %351 = vector.shape_cast %350 : vector<8x1xf32> to vector<1x8x1xf32>
    %cst_73 = arith.constant dense<0.000000e+00> : vector<1xf32>
    %352 = vector.multi_reduction <add>, %351, %cst_73 [1, 2] : vector<1x8x1xf32> to vector<1xf32>
    %353 = vector.shape_cast %352 : vector<1xf32> to vector<1x1x1xf32>
    %354 = vector.extract %353[0, 0, 0] : f32 from vector<1x1x1xf32>
    %cst_74 = arith.constant 1.250000e-01 : f32
    %355 = arith.mulf %354, %cst_74 : f32
    %cst_75 = arith.constant 2.000000e+00 : f32
    %356 = arith.mulf %cst_75, %322 : f32
    %357 = arith.mulf %356, %319 : f32
    %cst_76 = arith.constant 1.000000e+00 : f32
    %358 = arith.subf %cst_76, %319 : f32
    %359 = arith.mulf %357, %358 : f32
    %360 = arith.addf %355, %359 : f32
    %cst_77 = arith.constant 1.000000e+00 : f32
    %361 = arith.subf %cst_77, %319 : f32
    %362 = arith.mulf %319, %361 : f32
    %363 = arith.mulf %362, %322 : f32
    %364 = arith.mulf %363, %322 : f32
    %365 = arith.subf %360, %364 : f32
    %366 = tpu.iota {dimensions = array<i32: 1>} : vector<8x128xi32>
    %cst_78 = arith.constant 0.000000e+00 : f32
    %367 = vector.broadcast %cst_78 : f32 to vector<8x128xf32>
    %c0_i32_79 = arith.constant 0 : i32
    %368 = vector.broadcast %c0_i32_79 : i32 to vector<8x128xi32>
    %369 = arith.cmpi eq, %366, %368 : vector<8x128xi32>
    %370 = vector.extract_strided_slice %305 {offsets = [0, 0], sizes = [8, 1], strides = [1, 1]} : vector<8x2xf32> to vector<8x1xf32>
    %371 = vector.shape_cast %370 : vector<8x1xf32> to vector<8x1xf32>
    %372 = vector.broadcast %371 : vector<8x1xf32> to vector<8x128xf32>
    %373 = arith.select %369, %372, %367 : vector<8x128xi1>, vector<8x128xf32>
    %c1_i32_80 = arith.constant 1 : i32
    %374 = vector.broadcast %c1_i32_80 : i32 to vector<8x128xi32>
    %375 = arith.cmpi eq, %366, %374 : vector<8x128xi32>
    %376 = vector.extract_strided_slice %305 {offsets = [0, 1], sizes = [8, 1], strides = [1, 1]} : vector<8x2xf32> to vector<8x1xf32>
    %377 = vector.shape_cast %376 : vector<8x1xf32> to vector<8x1xf32>
    %378 = vector.broadcast %377 : vector<8x1xf32> to vector<8x128xf32>
    %379 = arith.select %375, %378, %373 : vector<8x128xi1>, vector<8x128xf32>
    %c2_i32_81 = arith.constant 2 : i32
    %380 = vector.broadcast %c2_i32_81 : i32 to vector<8x128xi32>
    %381 = arith.cmpi eq, %366, %380 : vector<8x128xi32>
    %382 = vector.shape_cast %313 : vector<8x1xf32> to vector<8x1xf32>
    %383 = vector.broadcast %382 : vector<8x1xf32> to vector<8x128xf32>
    %384 = arith.select %381, %383, %379 : vector<8x128xi1>, vector<8x128xf32>
    %c3_i32_82 = arith.constant 3 : i32
    %385 = vector.broadcast %c3_i32_82 : i32 to vector<8x128xi32>
    %386 = arith.cmpi eq, %366, %385 : vector<8x128xi32>
    %387 = vector.broadcast %365 : f32 to vector<8x128xf32>
    %388 = arith.select %386, %387, %384 : vector<8x128xi1>, vector<8x128xf32>
    %c0_83 = arith.constant 0 : index
    %c0_84 = arith.constant 0 : index
    %389 = vector.load %arg11[%c0_83, %c0_84] : memref<8x128xf32, #tpu.memory_space<vmem>>, vector<8x128xf32>
    tpu.vector_store %arg11[%c0_83, %c0_84], %388 {strides = array<i32>} : memref<8x128xf32, #tpu.memory_space<vmem>>, vector<8x128xf32>,
    return
  }
}

</mosaic_0001>

<bundles_post_ra>
// kernel: tpu_custom_call.1
= control target key start
LH: loop header
LB: loop body
LE: loop exit
PB: predicated region body
PF: predicated region fallthrough
CT: control target
= control target key end

     0   :  { %16 = vsyncpa [#allocation4], 0  ;;  %s2113_s0 = inlined_call_operand.vmem [shape: f32[64,32], index: 0, kind: input, shape index: {}]   ;;  %s2114_s1 = inlined_call_operand.vmem [shape: s32[8,1], index: 1, kind: input, shape index: {}]   ;;  %s2115_s2 = inlined_call_operand.vmem [shape: f32[32,128], index: 2, kind: input, shape index: {}]   ;;  %s2116_s3 = inlined_call_operand.vmem [shape: f32[32,128], index: 3, kind: input, shape index: {}]   ;;  %s2117_s4 = inlined_call_operand.vmem [shape: f32[1,128], index: 4, kind: input, shape index: {}]   ;;  %s2118_s5 = inlined_call_operand.vmem [shape: f32[32,32], index: 5, kind: input, shape index: {}]   ;;  %s2119_s6 = inlined_call_operand.vmem [shape: f32[1,32], index: 6, kind: input, shape index: {}]   ;;  %s2120_s7 = inlined_call_operand.vmem [shape: f32[32,2], index: 7, kind: input, shape index: {}]   ;;  %s2121_s8 = inlined_call_operand.vmem [shape: f32[1,2], index: 8, kind: input, shape index: {}]   ;;  %s2122_s9 = inlined_call_operand.vmem [shape: f32[8,1], index: 9, kind: input, shape index: {}]   ;;  %s2123_s10 = inlined_call_operand.vmem [shape: f32[3], index: 10, kind: input, shape index: {}]   ;;  %s2124_s11 = inlined_call_operand.hbm [shape: f32[8,128], index: 11, kind: output, shape index: {}]  }
   0x1   :  { %17 = vsyncpa [#allocation3], 0  ;;  %s44_s19 = sshll.u32 %s2123_s10, 4  ;;  %s45_s19 = int_to_ptr.vmem [resolvable:$true] %s44_s19 }
   0x2   :  { %s1652_s20 = scalar_lea.vmem %s45_s19, 16  ;;  %p1657_p1 = scmp.lt.s32.totalorder %s45_s19, %s45_s19 }
   0x3   :  { %p1653_p0 = scmp.ne.s32.totalorder %s45_s19, %s1652_s20  ;;  %p1658_p2 = scmp.lt.s32.totalorder %s1652_s20, %s1652_s20 }
   0x5   :  { %p1659_p3 = por %p1658_p2, %p1657_p1 }
   0x7   :  { %p1660_p4 = pnand %p1659_p3, %p1653_p0 }
   0x9   :  { %1663 = shalt.err (!%p1660_p4)
}
   0xa   :  { %s1688_s21 = smov [#allocation2]  }
   0xb   :  { %47 = dma.vmem_to_smem %s45_s19, 16, %s1688_s21, [#allocation4]  }
   0xc   :  { %1684 = dma.done.wait [#allocation4], 16  }
   0xd   :  { %1685 = vsyncadd [#allocation4], 4294967280 }
   0xe   :  { %51 = sfence }
   0xf   :  { %v63_v0 = vld [vmem:[%s2115_s2 + $0x18] sm:$0xff]  ;;  %v62_v1 = vld [vmem:[%s2115_s2 + $0x10] sm:$0xff]  ;;  %v1689_v3 = vmov 0.0   ;;  %v61_v5 = vld [vmem:[%s2115_s2 + $0x8] sm:$0xff]  ;;  %vm71_vm0 = vcmask 261120   ;;  %vm1690_vm1 = vmmov 0  }
  0x10   :  { %v1770_v2 = vld [vmem:[%s2116_s3 + $0x18] sm:$0xff]  ;;  %1433 = vmatprep.subr.mxu0 %v63_v0  ;;  %1453 = vmatprep.subr.mxu1 %v1689_v3  ;;  %v1776_v4 = vld [vmem:[%s2116_s3 + $0x10] sm:$0xff]  ;;  %v52_v6 = vld [vmem:[%s2113_s0] sm:$0xff]  ;;  %v1691_v12 = vmov 0   ;;  %s1692_s24 = smov 64   ;;  %vm1231_vm10 = vcmask 7168  }
  0x11   :  { %1434 = vmatpush3.msra.mxu0 %v63_v0  ;;  %1454 = vmatpush3.msra.mxu1 %v1770_v2  ;;  %v60_v7 = vld [vmem:[%s2115_s2] sm:$0xff]  ;;  %v1793_v8 = vld [vmem:[%s2116_s3 + $0x8] sm:$0xff]  ;;  %v54_v51 = vld [vmem:[%s2113_s0 + $0x10] sm:$0xff]  ;;  %s2077_s29 = sld [smem:[#allocation2 + $0x2]]  ;;  %s1696_s20 = smov 127  }
  0x12   :  { %1435 = vmatprep.subr.mxu0 %v62_v1  ;;  %1455 = vmatprep.subr.mxu1 %v1689_v3  ;;  %v53_v9 = vld [vmem:[%s2113_s0 + $0x8] sm:$0xff]  ;;  %v1803_v10 = vld [vmem:[%s2116_s3] sm:$0xff]  ;;  %v55_v52 = vld [vmem:[%s2113_s0 + $0x18] sm:$0xff]  ;;  %s1243_s18 = sld [smem:[#allocation2]]  ;;  %s1697_s3 = smov [#allocation5]  }
  0x13   :  { %1436 = vmatpush3.msra.mxu0 %v62_v1  ;;  %1456 = vmatpush3.msra.mxu1 %v1776_v4  ;;  %v205_v11 = vld [vmem:[%s2114_s1] sm:$0xff]  ;;  %s1693_s1 = smov 32   ;;  %v57_v54 = vld [vmem:[%s2113_s0 + $0x28] sm:$0xff]  ;;  %v58_v55 = vld [vmem:[%s2113_s0 + $0x30] sm:$0xff]  ;;  %s1369_s19 = sld [smem:[#allocation2 + $0x1]] }
  0x14   :  { %1437 = vmatprep.subr.mxu0 %v61_v5  ;;  %1457 = vmatprep.subr.mxu1 %v1689_v3  ;;  %v1838_v14 = vld [vmem:[%s2117_s4] ss:$0 sm:$0xff]  ;;  %v59_v56 = vld [vmem:[%s2113_s0 + $0x38] sm:$0xff]  ;;  %s1331_s22 = sshll.u32 %s1697_s3, 4  ;;  %s1332_s22 = int_to_ptr.vmem [resolvable:$true] %s1331_s22 }
  0x15   :  { %1438 = vmatpush3.msra.mxu0 %v61_v5  ;;  %1441 = vmatprep.mubr.msk.f32.mxu0 %vm71_vm0, %v52_v6  ;;  %v56_v53 = vld [vmem:[%s2113_s0 + $0x20] sm:$0xff]  ;;  %p1669_p6 = scmp.lt.s32.totalorder %s1332_s22, %s1332_s22 }
  0x16   :  { %1439 = vmatprep.subr.mxu0 %v60_v7  ;;  %1458 = vmatpush3.msra.mxu1 %v1793_v8 }
  0x17   :  { %1440 = vmatpush3.msra.mxu0 %v60_v7  ;;  %1459 = vmatprep.subr.mxu1 %v1689_v3  ;;  %s1269_s14 = smul.f32 2.0, %s2077_s29 }
  0x18   :  { %1442 = vmatmul.mubr.msk.f32.vlgmr.msra.gmra.mxu0 %vm71_vm0, %v53_v9  ;;  %1460 = vmatpush3.msra.mxu1 %v1803_v10 }
  0x19   :  { %1461 = vmatprep.mubr.msk.f32.mxu1 %vm1690_vm1, %v1689_v3  ;;  %1464 = vmatprep.subr.mxu1 %v1689_v3 }
  0x1a   :  { %1462 = vmatmul.mubr.f32.vlgmr.msra.gmra.mxu1 %v1689_v3  ;;  %1475 = vmatprep.subr.mxu0 %v1689_v3 }
  0x1b   :  { %1465 = vmatpush3.msra.mxu1 %v1770_v2  ;;  %1472 = vmatprep.mubr.msk.f32.mxu1 %vm1690_vm1, %v1689_v3 }
  0x1c   :  { %1466 = vmatprep.subr.mxu1 %v1689_v3  ;;  %1476 = vmatpush3.msra.mxu0 %v1770_v2 }
  0x1d   :  { %1467 = vmatpush3.msra.mxu1 %v1776_v4  ;;  %1477 = vmatprep.subr.mxu0 %v1689_v3 }
  0x1e   :  { %1468 = vmatprep.subr.mxu1 %v1689_v3  ;;  %1478 = vmatpush3.msra.mxu0 %v1776_v4 }
  0x1f   :  { %1469 = vmatpush3.msra.mxu1 %v1793_v8  ;;  %1479 = vmatprep.subr.mxu0 %v1689_v3 }
  0x20   :  { %1470 = vmatprep.subr.mxu1 %v1689_v3  ;;  %1480 = vmatpush3.msra.mxu0 %v1793_v8 }
  0x21   :  { %1471 = vmatpush3.msra.mxu1 %v1803_v10  ;;  %1481 = vmatprep.subr.mxu0 %v1689_v3 }
  0x22   :  { %1482 = vmatpush3.msra.mxu0 %v1803_v10  ;;  %1486 = vmatprep.subr.mxu1 %v1689_v3 }
  0x23   :  { %1497 = vmatprep.subr.mxu0 %v1689_v3  ;;  %1577 = vset.pattern.permute.xlu1 %v1691_v12 }
  0x24   :  { %207 = vperm.xlu1 %1577, %v205_v11   ;;  %1444 = vmatprep.mubr.msk.f32.mxu0 %vm71_vm0, %v54_v51 }
  0x25   :  { %1445 = vmatmul.mubr.msk.f32.gmra.mxu0 %vm71_vm0, %v55_v52 }
  0x26   :  { %1447 = vmatprep.mubr.msk.f32.mxu0 %vm71_vm0, %v56_v53 }
  0x29   :  { %1448 = vmatmul.mubr.msk.f32.gmra.mxu0 %vm71_vm0, %v57_v54 }
  0x2a   :  { %1450 = vmatprep.mubr.msk.f32.mxu0 %vm71_vm0, %v58_v55 }
  0x2d   :  { %1451 = vmatmul.mubr.msk.f32.gmra.mxu0 %vm71_vm0, %v59_v56 }
  0x2e   :  { %1483 = vmatprep.mubr.msk.f32.mxu0 %vm1690_vm1, %v1689_v3 }
  0x9f   :  { %v1844_v31 = vpop.permute.xlu1 %207 }
  0xa0   :  { %vm307_vm2 = vcmp.gt.s32.totalorder %v1844_v31, 0  ;;  %vm411_vm3 = vcmp.gt.s32.totalorder %v1844_v31, 1  ;;  %vm516_vm4 = vcmp.gt.s32.totalorder %v1844_v31, 2  ;;  %vm621_vm5 = vcmp.gt.s32.totalorder %v1844_v31, 3 }
  0xa1   :  { %vm726_vm6 = vcmp.gt.s32.totalorder %v1844_v31, 4  ;;  %vm831_vm7 = vcmp.gt.s32.totalorder %v1844_v31, 5  ;;  %vm936_vm8 = vcmp.gt.s32.totalorder %v1844_v31, 6  ;;  %vm1041_vm9 = vcmp.gt.s32.totalorder %v1844_v31, 7 }
  0xd8   :  { %v1443_v13 = vpop.f32.mrf.mxu0 }
  0xd9   :  { %v168_v36 = vadd.f32 %v1443_v13, %v1838_v14 }
  0xda   :  { %v162_v15 = vpop.f32.mrf.mxu0  ;;  %v278_v16 = vpop.f32.mrf.mxu1 }
  0xdb   :  { %v163_v17 = vadd.f32 %v1838_v14, %v162_v15 }
  0xdc   :  { %v1463_v18 = vpop.f32.mrf.mxu1 }
  0xdd   :  { %v282_v19 = vadd.f32 %v278_v16, %v163_v17 }
  0xdf   :  { %1580 = vtanh.f32 %v282_v19  ;;  %v1349_v21 = vmul.f32 -1.442695, %v282_v19 }
  0xe1   :  { %1582 = vpow2.f32 %v1349_v21 }
  0xe5   :  { %v1446_v62 = vpop.f32.mrf.mxu0 }
  0xe7   :  { %v172_v63 = vpop.f32.mrf.mxu0 }
  0xe8   :  { %v173_v7 = vadd.f32 %v1838_v14, %v172_v63 }
  0xe9   :  { %v1912_v0 = vpop.f32.mrf.mxu0 }
  0xeb   :  { %v1914_v1 = vpop.f32.mrf.mxu0 }
  0xec   :  { %v1581_v20 = vpop.eup %1580 }
  0xed   :  { %292 = vrot.lane.b32.xlu0 %v1581_v20, %s1692_s24  ;;  %v1916_v5 = vpop.f32.mrf.mxu0 }
  0xee   :  { %v1583_v22 = vpop.eup %1582 }
  0xef   :  { %v286_v23 = vadd.f32 1.0, %v1583_v22  ;;  %v1918_v6 = vpop.f32.mrf.mxu0 }
  0xf1   :  { %1584 = vrcp.f32 %v286_v23 }
  0xfe   :  { %v1585_v24 = vpop.eup %1584 }
  0xff   :  { %v290_v27 = vmul.f32 0.0, %v1585_v24 }
 0x15f   :  { %v293_v25 = vpop.permute.xlu0 %292 }
 0x160   :  { %v295_v26 = vmul.f32 %v1585_v24, %v293_v25 }
 0x162   :  { %297 = vrot.lane.b32.xlu0 %v295_v26, %s1693_s1 }
 0x1d4   :  { %v298_v28 = vpop.permute.xlu0 %297 }
 0x1d5   :  { %v300_v29 = vadd.f32 %v298_v28, %v290_v27 }
 0x1d7   :  { %1586 = vtanh.f32 %v300_v29  ;;  %v308_v47 = vsel %vm307_vm2, %v300_v29, 0.0 }
 0x1e4   :  { %v1587_v30 = vpop.eup %1586 }
 0x1e5   :  { %303 = vrot.lane.b32.xlu1 %v1587_v30, %s1692_s24 }
 0x257   :  { %v304_v32 = vpop.permute.xlu1 %303 }
 0x258   :  { %v306_v33 = vmul.f32 %v1585_v24, %v304_v32 }
 0x25a   :  { %v1849_v34 = vsel %vm307_vm2, %v306_v33, 0.0 }
 0x25b   :  { %312 = vrot.lane.b32.xlu0 %v1849_v34, %s1693_s1 }
 0x2cd   :  { %v313_v35 = vpop.permute.xlu0 %312 }
 0x2ce   :  { %1473 = vmatmul.mubr.msk.f32.vlgmr.msra.gmra.mxu1 %vm71_vm0, %v313_v35 }
 0x2cf   :  { %1487 = vmatpush3.msra.mxu1 %v1770_v2  ;;  %1494 = vmatprep.mubr.msk.f32.mxu1 %vm1690_vm1, %v1689_v3 }
 0x2d0   :  { %1488 = vmatprep.subr.mxu1 %v1689_v3 }
 0x2d1   :  { %1489 = vmatpush3.msra.mxu1 %v1776_v4 }
 0x2d2   :  { %1490 = vmatprep.subr.mxu1 %v1689_v3 }
 0x2d3   :  { %1491 = vmatpush3.msra.mxu1 %v1793_v8 }
 0x2d4   :  { %1492 = vmatprep.subr.mxu1 %v1689_v3 }
 0x2d5   :  { %1493 = vmatpush3.msra.mxu1 %v1803_v10 }
 0x2d6   :  { %1508 = vmatprep.subr.mxu1 %v1689_v3 }
 0x38e   :  { %v382_v37 = vpop.f32.mrf.mxu1 }
 0x38f   :  { %v386_v38 = vadd.f32 %v382_v37, %v168_v36 }
 0x390   :  { %v1474_v39 = vpop.f32.mrf.mxu1 }
 0x391   :  { %1588 = vtanh.f32 %v386_v38  ;;  %v1351_v41 = vmul.f32 -1.442695, %v386_v38 }
 0x393   :  { %1590 = vpow2.f32 %v1351_v41 }
 0x39e   :  { %v1589_v40 = vpop.eup %1588 }
 0x39f   :  { %396 = vrot.lane.b32.xlu1 %v1589_v40, %s1692_s24 }
 0x3a0   :  { %v1591_v42 = vpop.eup %1590 }
 0x3a1   :  { %v390_v43 = vadd.f32 1.0, %v1591_v42 }
 0x3a3   :  { %1592 = vrcp.f32 %v390_v43 }
 0x3b0   :  { %v1593_v44 = vpop.eup %1592 }
 0x3b1   :  { %v394_v48 = vmul.f32 %v1593_v44, %v308_v47 }
 0x411   :  { %v397_v45 = vpop.permute.xlu1 %396 }
 0x412   :  { %v399_v46 = vmul.f32 %v1593_v44, %v397_v45 }
 0x414   :  { %401 = vrot.lane.b32.xlu0 %v399_v46, %s1693_s1 }
 0x486   :  { %v402_v49 = vpop.permute.xlu0 %401 }
 0x487   :  { %v404_v50 = vadd.f32 %v402_v49, %v394_v48 }
 0x489   :  { %1594 = vtanh.f32 %v404_v50  ;;  %v412_v21 = vsel %vm411_vm3, %v404_v50, %v308_v47 }
 0x496   :  { %v1595_v57 = vpop.eup %1594 }
 0x497   :  { %407 = vrot.lane.b32.xlu1 %v1595_v57, %s1692_s24  ;;  %v183_v57 = vadd.f32 %v1838_v14, %v1914_v1 }
 0x509   :  { %v408_v58 = vpop.permute.xlu1 %407 }
 0x50a   :  { %v410_v59 = vmul.f32 %v1593_v44, %v408_v58 }
 0x50c   :  { %v413_v60 = vsel %vm411_vm3, %v410_v59, %v1849_v34  ;;  %v414_v26 = vsel %vm411_vm3, %v410_v59, 0.0 }
 0x50d   :  { %417 = vrot.lane.b32.xlu0 %v413_v60, %s1693_s1  ;;  %v415_v29 = vadd.f32 %v414_v26, %v1849_v34  ;;  %v178_v34 = vadd.f32 %v1446_v62, %v1838_v14 }
 0x57f   :  { %v418_v61 = vpop.permute.xlu0 %417 }
 0x580   :  { %1484 = vmatmul.mubr.msk.f32.vlgmr.msra.gmra.mxu0 %vm71_vm0, %v418_v61 }
 0x581   :  { %1498 = vmatpush3.msra.mxu0 %v1770_v2  ;;  %1505 = vmatprep.mubr.msk.f32.mxu0 %vm1690_vm1, %v1689_v3 }
 0x582   :  { %1499 = vmatprep.subr.mxu0 %v1689_v3 }
 0x583   :  { %1500 = vmatpush3.msra.mxu0 %v1776_v4 }
 0x584   :  { %1501 = vmatprep.subr.mxu0 %v1689_v3 }
 0x585   :  { %1502 = vmatpush3.msra.mxu0 %v1793_v8 }
 0x586   :  { %1503 = vmatprep.subr.mxu0 %v1689_v3 }
 0x587   :  { %1504 = vmatpush3.msra.mxu0 %v1803_v10 }
 0x588   :  { %1519 = vmatprep.subr.mxu0 %v1689_v3 }
 0x640   :  { %v487_v9 = vpop.f32.mrf.mxu0 }
 0x641   :  { %v491_v11 = vadd.f32 %v487_v9, %v173_v7 }
 0x642   :  { %v1485_v12 = vpop.f32.mrf.mxu0 }
 0x643   :  { %1596 = vtanh.f32 %v491_v11  ;;  %v1353_v15 = vmul.f32 -1.442695, %v491_v11 }
 0x645   :  { %1598 = vpow2.f32 %v1353_v15 }
 0x650   :  { %v1597_v13 = vpop.eup %1596 }
 0x651   :  { %501 = vrot.lane.b32.xlu1 %v1597_v13, %s1692_s24 }
 0x652   :  { %v1599_v16 = vpop.eup %1598 }
 0x653   :  { %v495_v17 = vadd.f32 1.0, %v1599_v16 }
 0x655   :  { %1600 = vrcp.f32 %v495_v17 }
 0x662   :  { %v1601_v18 = vpop.eup %1600 }
 0x663   :  { %v499_v22 = vmul.f32 %v1601_v18, %v412_v21 }
 0x6c3   :  { %v502_v19 = vpop.permute.xlu1 %501 }
 0x6c4   :  { %v504_v20 = vmul.f32 %v1601_v18, %v502_v19 }
 0x6c6   :  { %506 = vrot.lane.b32.xlu0 %v504_v20, %s1693_s1 }
 0x738   :  { %v507_v23 = vpop.permute.xlu0 %506 }
 0x739   :  { %v509_v24 = vadd.f32 %v507_v23, %v499_v22 }
 0x73b   :  { %1602 = vtanh.f32 %v509_v24  ;;  %v517_v46 = vsel %vm516_vm4, %v509_v24, %v412_v21 }
 0x748   :  { %v1603_v25 = vpop.eup %1602 }
 0x749   :  { %512 = vrot.lane.b32.xlu1 %v1603_v25, %s1692_s24 }
 0x7bb   :  { %v513_v27 = vpop.permute.xlu1 %512 }
 0x7bc   :  { %v515_v28 = vmul.f32 %v1601_v18, %v513_v27 }
 0x7be   :  { %v519_v30 = vsel %vm516_vm4, %v515_v28, 0.0  ;;  %v518_v32 = vsel %vm516_vm4, %v515_v28, %v413_v60 }
 0x7bf   :  { %v520_v33 = vadd.f32 %v519_v30, %v415_v29  ;;  %522 = vrot.lane.b32.xlu0 %v518_v32, %s1693_s1 }
 0x831   :  { %v523_v35 = vpop.permute.xlu0 %522 }
 0x832   :  { %1495 = vmatmul.mubr.msk.f32.vlgmr.msra.gmra.mxu1 %vm71_vm0, %v523_v35 }
 0x833   :  { %1509 = vmatpush3.msra.mxu1 %v1770_v2  ;;  %1516 = vmatprep.mubr.msk.f32.mxu1 %vm1690_vm1, %v1689_v3 }
 0x834   :  { %1510 = vmatprep.subr.mxu1 %v1689_v3 }
 0x835   :  { %1511 = vmatpush3.msra.mxu1 %v1776_v4 }
 0x836   :  { %1512 = vmatprep.subr.mxu1 %v1689_v3 }
 0x837   :  { %1513 = vmatpush3.msra.mxu1 %v1793_v8 }
 0x838   :  { %1514 = vmatprep.subr.mxu1 %v1689_v3 }
 0x839   :  { %1515 = vmatpush3.msra.mxu1 %v1803_v10 }
 0x83a   :  { %1530 = vmatprep.subr.mxu1 %v1689_v3 }
 0x8f2   :  { %v592_v36 = vpop.f32.mrf.mxu1 }
 0x8f3   :  { %v596_v37 = vadd.f32 %v592_v36, %v178_v34 }
 0x8f4   :  { %v1496_v38 = vpop.f32.mrf.mxu1 }
 0x8f5   :  { %1604 = vtanh.f32 %v596_v37  ;;  %v1355_v40 = vmul.f32 -1.442695, %v596_v37 }
 0x8f7   :  { %1606 = vpow2.f32 %v1355_v40 }
 0x902   :  { %v1605_v39 = vpop.eup %1604 }
 0x903   :  { %606 = vrot.lane.b32.xlu1 %v1605_v39, %s1692_s24 }
 0x904   :  { %v1607_v41 = vpop.eup %1606 }
 0x905   :  { %v600_v42 = vadd.f32 1.0, %v1607_v41 }
 0x907   :  { %1608 = vrcp.f32 %v600_v42  ;;  %v193_v42 = vadd.f32 %v1838_v14, %v1918_v6 }
 0x914   :  { %v1609_v43 = vpop.eup %1608 }
 0x915   :  { %v604_v47 = vmul.f32 %v1609_v43, %v517_v46 }
 0x975   :  { %v607_v44 = vpop.permute.xlu1 %606 }
 0x976   :  { %v609_v45 = vmul.f32 %v1609_v43, %v607_v44 }
 0x978   :  { %611 = vrot.lane.b32.xlu0 %v609_v45, %s1693_s1 }
 0x9ea   :  { %v612_v48 = vpop.permute.xlu0 %611 }
 0x9eb   :  { %v614_v49 = vadd.f32 %v612_v48, %v604_v47 }
 0x9ed   :  { %1610 = vtanh.f32 %v614_v49  ;;  %v622_v1 = vsel %vm621_vm5, %v614_v49, %v517_v46 }
 0x9fa   :  { %v1611_v50 = vpop.eup %1610 }
 0x9fb   :  { %617 = vrot.lane.b32.xlu1 %v1611_v50, %s1692_s24 }
 0xa6d   :  { %v618_v51 = vpop.permute.xlu1 %617 }
 0xa6e   :  { %v620_v52 = vmul.f32 %v1609_v43, %v618_v51 }
 0xa70   :  { %v624_v53 = vsel %vm621_vm5, %v620_v52, 0.0  ;;  %v623_v54 = vsel %vm621_vm5, %v620_v52, %v518_v32 }
 0xa71   :  { %v625_v55 = vadd.f32 %v624_v53, %v520_v33  ;;  %627 = vrot.lane.b32.xlu0 %v623_v54, %s1693_s1 }
 0xae3   :  { %v628_v56 = vpop.permute.xlu0 %627 }
 0xae4   :  { %1506 = vmatmul.mubr.msk.f32.vlgmr.msra.gmra.mxu0 %vm71_vm0, %v628_v56 }
 0xae5   :  { %1520 = vmatpush3.msra.mxu0 %v1770_v2  ;;  %1527 = vmatprep.mubr.msk.f32.mxu0 %vm1690_vm1, %v1689_v3 }
 0xae6   :  { %1521 = vmatprep.subr.mxu0 %v1689_v3 }
 0xae7   :  { %1522 = vmatpush3.msra.mxu0 %v1776_v4 }
 0xae8   :  { %1523 = vmatprep.subr.mxu0 %v1689_v3 }
 0xae9   :  { %1524 = vmatpush3.msra.mxu0 %v1793_v8 }
 0xaea   :  { %1525 = vmatprep.subr.mxu0 %v1689_v3 }
 0xaeb   :  { %1526 = vmatpush3.msra.mxu0 %v1803_v10 }
 0xaec   :  { %1541 = vmatprep.subr.mxu0 %v1689_v3 }
 0xba4   :  { %v697_v58 = vpop.f32.mrf.mxu0 }
 0xba5   :  { %v701_v59 = vadd.f32 %v697_v58, %v183_v57 }
 0xba6   :  { %v1507_v60 = vpop.f32.mrf.mxu0 }
 0xba7   :  { %1612 = vtanh.f32 %v701_v59  ;;  %v1357_v62 = vmul.f32 -1.442695, %v701_v59 }
 0xba9   :  { %1614 = vpow2.f32 %v1357_v62 }
 0xbb4   :  { %v1613_v61 = vpop.eup %1612 }
 0xbb5   :  { %711 = vrot.lane.b32.xlu1 %v1613_v61, %s1692_s24 }
 0xbb6   :  { %v1615_v63 = vpop.eup %1614 }
 0xbb7   :  { %v705_v7 = vadd.f32 1.0, %v1615_v63  ;;  %v198_v63 = vadd.f32 %v1916_v5, %v1838_v14 }
 0xbb9   :  { %1616 = vrcp.f32 %v705_v7 }
 0xbc6   :  { %v1617_v9 = vpop.eup %1616 }
 0xbc7   :  { %v709_v13 = vmul.f32 %v1617_v9, %v622_v1 }
 0xc27   :  { %v712_v11 = vpop.permute.xlu1 %711 }
 0xc28   :  { %v714_v12 = vmul.f32 %v1617_v9, %v712_v11 }
 0xc2a   :  { %716 = vrot.lane.b32.xlu0 %v714_v12, %s1693_s1 }
 0xc9c   :  { %v717_v15 = vpop.permute.xlu0 %716 }
 0xc9d   :  { %v719_v16 = vadd.f32 %v717_v15, %v709_v13 }
 0xc9f   :  { %1618 = vtanh.f32 %v719_v16 }
 0xcac   :  { %v1619_v17 = vpop.eup %1618 }
 0xcad   :  { %722 = vrot.lane.b32.xlu1 %v1619_v17, %s1692_s24 }
 0xd1f   :  { %v723_v18 = vpop.permute.xlu1 %722 }
 0xd20   :  { %v725_v19 = vmul.f32 %v1617_v9, %v723_v18 }
 0xd22   :  { %v729_v20 = vsel %vm726_vm6, %v725_v19, 0.0  ;;  %v728_v21 = vsel %vm726_vm6, %v725_v19, %v623_v54 }
 0xd23   :  { %v730_v22 = vadd.f32 %v729_v20, %v625_v55  ;;  %732 = vrot.lane.b32.xlu0 %v728_v21, %s1693_s1 }
 0xd95   :  { %v733_v23 = vpop.permute.xlu0 %732 }
 0xd96   :  { %1517 = vmatmul.mubr.msk.f32.vlgmr.msra.gmra.mxu1 %vm71_vm0, %v733_v23  ;;  %v1049_v23 = vld [vmem:[%s2118_s5 + $0x8] sm:$0xff] }
 0xd97   :  { %1531 = vmatpush3.msra.mxu1 %v1770_v2  ;;  %1538 = vmatprep.mubr.msk.f32.mxu1 %vm1690_vm1, %v1689_v3  ;;  %v188_v2 = vadd.f32 %v1912_v0, %v1838_v14  ;;  %v727_v0 = vsel %vm726_vm6, %v719_v16, %v622_v1 }
 0xd98   :  { %1532 = vmatprep.subr.mxu1 %v1689_v3 }
 0xd99   :  { %1533 = vmatpush3.msra.mxu1 %v1776_v4 }
 0xd9a   :  { %1534 = vmatprep.subr.mxu1 %v1689_v3 }
 0xd9b   :  { %1535 = vmatpush3.msra.mxu1 %v1793_v8 }
 0xd9c   :  { %1536 = vmatprep.subr.mxu1 %v1689_v3 }
 0xd9d   :  { %1537 = vmatpush3.msra.mxu1 %v1803_v10 }
 0xd9e   :  { %1552 = vmatprep.subr.mxu1 %v1689_v3 }
 0xe56   :  { %v802_v24 = vpop.f32.mrf.mxu1 }
 0xe57   :  { %v806_v25 = vadd.f32 %v802_v24, %v188_v2  ;;  %v1048_v2 = vld [vmem:[%s2118_s5] sm:$0xff] }
 0xe58   :  { %v1518_v26 = vpop.f32.mrf.mxu1 }
 0xe59   :  { %1620 = vtanh.f32 %v806_v25  ;;  %v1359_v4 = vmul.f32 -1.442695, %v806_v25  ;;  %v1044_v25 = vcvt.s32.f32 %v1844_v31  ;;  %v1136_v31 = vld [vmem:[%s2120_s7 + $0x8] sm:$0xff] }
 0xe5b   :  { %1622 = vpow2.f32 %v1359_v4 }
 0xe66   :  { %v1621_v27 = vpop.eup %1620 }
 0xe67   :  { %816 = vrot.lane.b32.xlu1 %v1621_v27, %s1692_s24 }
 0xe68   :  { %v1623_v28 = vpop.eup %1622 }
 0xe69   :  { %v810_v8 = vadd.f32 1.0, %v1623_v28 }
 0xe6b   :  { %1624 = vrcp.f32 %v810_v8 }
 0xe78   :  { %v1625_v29 = vpop.eup %1624 }
 0xe79   :  { %v814_v32 = vmul.f32 %v1625_v29, %v727_v0 }
 0xed9   :  { %v817_v30 = vpop.permute.xlu1 %816 }
 0xeda   :  { %v819_v10 = vmul.f32 %v1625_v29, %v817_v30 }
 0xedc   :  { %821 = vrot.lane.b32.xlu0 %v819_v10, %s1693_s1  ;;  %v1138_v10 = vld [vmem:[%s2120_s7 + $0x18] sm:$0xff] }
 0xf4e   :  { %v822_v33 = vpop.permute.xlu0 %821 }
 0xf4f   :  { %v824_v35 = vadd.f32 %v822_v33, %v814_v32  ;;  %v1135_v32 = vld [vmem:[%s2120_s7] sm:$0xff] }
 0xf50   :  { %v1230_v33 = vld [vmem:[%s2122_s9] sm:$0xff] }
 0xf51   :  { %1626 = vtanh.f32 %v824_v35  ;;  %v832_v6 = vsel %vm831_vm7, %v824_v35, %v727_v0  ;;  %v1137_v0 = vld [vmem:[%s2120_s7 + $0x10] sm:$0xff]  ;;  %v1232_v35 = vsel %vm1231_vm10, %v1230_v33, 0.0 }
 0xf5e   :  { %v1627_v34 = vpop.eup %1626 }
 0xf5f   :  { %827 = vrot.lane.b32.xlu1 %v1627_v34, %s1692_s24  ;;  %v1364_v34 = vld [vmem:[%s2119_s6] ss:$0 sm:$0xff]  ;;  %s1694_s6 = smov 1  }
 0xfd1   :  { %v828_v36 = vpop.permute.xlu1 %827 }
 0xfd2   :  { %v830_v37 = vmul.f32 %v1625_v29, %v828_v36 }
 0xfd4   :  { %v834_v38 = vsel %vm831_vm7, %v830_v37, 0.0  ;;  %v833_v39 = vsel %vm831_vm7, %v830_v37, %v728_v21  ;;  %v1051_v21 = vld [vmem:[%s2118_s5 + $0x18] sm:$0xff] }
 0xfd5   :  { %v835_v40 = vadd.f32 %v834_v38, %v730_v22  ;;  %837 = vrot.lane.b32.xlu0 %v833_v39, %s1693_s1  ;;  %v1050_v22 = vld [vmem:[%s2118_s5 + $0x10] sm:$0xff] }
0x1047   :  { %v838_v41 = vpop.permute.xlu0 %837 }
0x1048   :  { %1528 = vmatmul.mubr.msk.f32.vlgmr.msra.gmra.mxu0 %vm71_vm0, %v838_v41 }
0x1049   :  { %1549 = vmatprep.mubr.msk.f32.mxu0 %vm1690_vm1, %v1689_v3  ;;  %1542 = vmatpush3.msra.mxu0 %v1051_v21 }
0x104a   :  { %1543 = vmatprep.subr.mxu0 %v1689_v3 }
0x104b   :  { %1544 = vmatpush3.msra.mxu0 %v1050_v22 }
0x104c   :  { %1545 = vmatprep.subr.mxu0 %v1689_v3 }
0x104d   :  { %1546 = vmatpush3.msra.mxu0 %v1049_v23 }
0x104e   :  { %1547 = vmatprep.subr.mxu0 %v1689_v3 }
0x104f   :  { %1548 = vmatpush3.msra.mxu0 %v1048_v2 }
0x1108   :  { %v907_v43 = vpop.f32.mrf.mxu0 }
0x1109   :  { %v911_v44 = vadd.f32 %v907_v43, %v193_v42 }
0x110a   :  { %v1529_v45 = vpop.f32.mrf.mxu0 }
0x110b   :  { %1628 = vtanh.f32 %v911_v44  ;;  %v1361_v47 = vmul.f32 -1.442695, %v911_v44 }
0x110d   :  { %1630 = vpow2.f32 %v1361_v47 }
0x1118   :  { %v1629_v46 = vpop.eup %1628 }
0x1119   :  { %921 = vrot.lane.b32.xlu1 %v1629_v46, %s1692_s24  ;;  %v1366_v46 = vld [vmem:[%s2121_s8] ss:$0 sm:$0xff] }
0x111a   :  { %v1631_v48 = vpop.eup %1630 }
0x111b   :  { %v915_v49 = vadd.f32 1.0, %v1631_v48 }
0x111d   :  { %1632 = vrcp.f32 %v915_v49 }
0x112a   :  { %v1633_v50 = vpop.eup %1632 }
0x112b   :  { %v919_v53 = vmul.f32 %v1633_v50, %v832_v6 }
0x118b   :  { %v922_v51 = vpop.permute.xlu1 %921 }
0x118c   :  { %v924_v52 = vmul.f32 %v1633_v50, %v922_v51  ;;  %v1695_v51 = vmov 1  }
0x118d   :  { %1578 = vset.pattern.permute.xlu0 %v1695_v51 }
0x118e   :  { %926 = vrot.lane.b32.xlu0 %v924_v52, %s1693_s1 }
0x1200   :  { %v927_v54 = vpop.permute.xlu0 %926 }
0x1201   :  { %v929_v55 = vadd.f32 %v927_v54, %v919_v53 }
0x1203   :  { %1634 = vtanh.f32 %v929_v55  ;;  %v937_v14 = vsel %vm936_vm8, %v929_v55, %v832_v6 }
0x1210   :  { %v1635_v56 = vpop.eup %1634 }
0x1211   :  { %932 = vrot.lane.b32.xlu1 %v1635_v56, %s1692_s24 }
0x1283   :  { %v933_v57 = vpop.permute.xlu1 %932 }
0x1284   :  { %v935_v58 = vmul.f32 %v1633_v50, %v933_v57  ;;  %v1246_v50 = vsub.f32 1.0, %v1230_v33  ;;  %v1248_v57 = vstv %s1243_s18 }
0x1286   :  { %v939_v59 = vsel %vm936_vm8, %v935_v58, 0.0  ;;  %v938_v60 = vsel %vm936_vm8, %v935_v58, %v833_v39  ;;  %v1258_v58 = vstv %s1369_s19 }
0x1287   :  { %v940_v61 = vadd.f32 %v939_v59, %v835_v40  ;;  %942 = vrot.lane.b32.xlu0 %v938_v60, %s1693_s1 }
0x12f9   :  { %v943_v62 = vpop.permute.xlu0 %942 }
0x12fa   :  { %1539 = vmatmul.mubr.msk.f32.vlgmr.msra.gmra.mxu1 %vm71_vm0, %v943_v62 }
0x12fb   :  { %1560 = vmatprep.mubr.msk.f32.mxu1 %vm1690_vm1, %v1689_v3  ;;  %1553 = vmatpush3.msra.mxu1 %v1138_v10 }
0x12fc   :  { %1554 = vmatprep.subr.mxu1 %v1689_v3 }
0x12fd   :  { %1555 = vmatpush3.msra.mxu1 %v1137_v0 }
0x12fe   :  { %1556 = vmatprep.subr.mxu1 %v1689_v3 }
0x12ff   :  { %1557 = vmatpush3.msra.mxu1 %v1136_v31 }
0x1300   :  { %1558 = vmatprep.subr.mxu1 %v1689_v3 }
0x1301   :  { %1559 = vmatpush3.msra.mxu1 %v1135_v32 }
0x13ba   :  { %v1012_v7 = vpop.f32.mrf.mxu1 }
0x13bb   :  { %v1016_v9 = vadd.f32 %v1012_v7, %v198_v63 }
0x13bc   :  { %v1540_v11 = vpop.f32.mrf.mxu1 }
0x13bd   :  { %1636 = vtanh.f32 %v1016_v9  ;;  %v1363_v1 = vmul.f32 -1.442695, %v1016_v9 }
0x13bf   :  { %1638 = vpow2.f32 %v1363_v1 }
0x13ca   :  { %v1637_v12 = vpop.eup %1636 }
0x13cb   :  { %1026 = vrot.lane.b32.xlu1 %v1637_v12, %s1692_s24 }
0x13cc   :  { %v1639_v13 = vpop.eup %1638 }
0x13cd   :  { %v1020_v15 = vadd.f32 1.0, %v1639_v13 }
0x13cf   :  { %1640 = vrcp.f32 %v1020_v15 }
0x13dc   :  { %v1641_v16 = vpop.eup %1640 }
0x13dd   :  { %v1024_v5 = vmul.f32 %v1641_v16, %v937_v14  ;;  %v1275_v14 = vstv %s1269_s14 }
0x143d   :  { %v1027_v17 = vpop.permute.xlu1 %1026 }
0x143e   :  { %v1029_v18 = vmul.f32 %v1641_v16, %v1027_v17 }
0x1440   :  { %1031 = vrot.lane.b32.xlu0 %v1029_v18, %s1693_s1 }
0x14b2   :  { %v1032_v19 = vpop.permute.xlu0 %1031 }
0x14b3   :  { %v1034_v20 = vadd.f32 %v1032_v19, %v1024_v5 }
0x14b5   :  { %1642 = vtanh.f32 %v1034_v20 }
0x14b6   :  { %1644 = vrcp.f32 %v1044_v25 }
0x14c2   :  { %v1643_v24 = vpop.eup %1642 }
0x14c3   :  { %1037 = vrot.lane.b32.xlu1 %v1643_v24, %s1692_s24  ;;  %v1645_v8 = vpop.eup %1644  ;;  %s1664_s24 = scalar_lea.vmem %s1332_s22, 128 }
0x14c4   :  { %p1665_p5 = scmp.ne.s32.totalorder %s1332_s22, %s1664_s24  ;;  %p1670_p7 = scmp.lt.s32.totalorder %s1664_s24, %s1664_s24 }
0x14c6   :  { %p1671_p8 = por %p1670_p7, %p1669_p6 }
0x14c8   :  { %p1672_p9 = pnand %p1671_p8, %p1665_p5 }
0x14e7   :  { %1233 = vadd.xlane.f32.xlu1 %v1232_v35 }
0x1535   :  { %v1038_v26 = vpop.permute.xlu1 %1037 }
0x1536   :  { %v1040_v27 = vmul.f32 %v1641_v16, %v1038_v26 }
0x1538   :  { %v1042_v4 = vsel %vm1041_vm9, %v1040_v27, 0.0 }
0x1539   :  { %v1043_v28 = vadd.f32 %v1042_v4, %v940_v61 }
0x153b   :  { %v1047_v29 = vmul.f32 %v1645_v8, %v1043_v28 }
0x153d   :  { %1060 = vrot.lane.b32.xlu0 %v1047_v29, %s1693_s1  ;;  %v1300_v29 = vlaneseq }
0x1570   :  { %v1234_v3 = vpop.xlane.xlu1 %1233 }
0x1571   :  { %v1235_v40 = vrot.slane %v1234_v3, 4 }
0x1573   :  { %v1236_v41 = vadd.f32 %v1235_v40, %v1234_v3 }
0x1575   :  { %v1237_v42 = vrot.slane %v1236_v41, 2 }
0x1577   :  { %v1238_v43 = vadd.f32 %v1237_v42, %v1236_v41 }
0x1579   :  { %v1239_v44 = vrot.slane %v1238_v43, 1 }
0x157b   :  { %v1240_v45 = vadd.f32 %v1239_v44, %v1238_v43 }
0x157d   :  { %1563 = vpush %v1240_v45 }
0x15ae   :  { %s1564_s30 = spop %1563 }
0x15af   :  { %v1061_v30 = vpop.permute.xlu0 %1060  ;;  %s2079_s12 = smul.f32 0.125, %s1564_s30 }
0x15b0   :  { %1550 = vmatmul.mubr.msk.f32.vlgmr.msra.gmra.mxu0 %vm71_vm0, %v1061_v30  ;;  %v1301_v30 = vand.u32 127, %v1300_v29 }
0x15b1   :  { %s2082_s8 = ssub.f32 1.0, %s2079_s12  ;;  %s2090_s15 = smul.f32 %s1269_s14, %s2079_s12  ;;  %v1261_v61 = vstv %s2079_s12 }
0x15b2   :  { %vm1302_vm11 = vcmp.eq.s32.totalorder %v1301_v30, 0  ;;  %vm1308_vm12 = vcmp.eq.s32.totalorder %v1301_v30, 1  ;;  %vm1314_vm13 = vcmp.eq.s32.totalorder %v1301_v30, 2  ;;  %vm1321_vm14 = vcmp.eq.s32.totalorder %v1301_v30, 3 }
0x15b3   :  { %s1296_s13 = smul.f32 %s2082_s8, %s2079_s12  ;;  %v1251_v60 = vstv %s2082_s8 }
0x15b4   :  { %s1294_s16 = smul.f32 %s2090_s15, %s2082_s8 }
0x15b5   :  { %s2093_s0 = smul.f32 %s2077_s29, %s1296_s13 }
0x15b7   :  { %s1298_s17 = smul.f32 %s2077_s29, %s2093_s0 }
0x1670   :  { %v1130_v36 = vpop.f32.mrf.mxu0 }
0x1671   :  { %v1131_v37 = vadd.f32 %v1364_v34, %v1130_v36 }
0x1672   :  { %v1551_v38 = vpop.f32.mrf.mxu0 }
0x1673   :  { %1646 = vtanh.f32 %v1131_v37 }
0x1680   :  { %v1647_v39 = vpop.eup %1646 }
0x1681   :  { %1561 = vmatmul.mubr.msk.f32.vlgmr.msra.gmra.mxu1 %vm71_vm0, %v1647_v39 }
0x1741   :  { %v1215_v47 = vpop.f32.mrf.mxu1 }
0x1742   :  { %v1216_v48 = vadd.f32 %v1366_v46, %v1215_v47 }
0x1743   :  { %v1562_v49 = vpop.f32.mrf.mxu1 }
0x1744   :  { %1304 = vperm.xlu1 %1577, %v1216_v48   ;;  %1220 = vrot.lane.b32.xlu0 %v1216_v48, %s1694_s6 }
0x1748   :  { %1254 = vrot.lane.b32.xlu0 %v1230_v33, %s1694_s6  ;;  %1579 = vset.pattern.permute.xlu1 %v1695_v51 }
0x174c   :  { %1264 = vrot.lane.b32.xlu0 %v1246_v50, %s1694_s6 }
0x17b6   :  { %v1221_v52 = vpop.permute.xlu0 %1220 }
0x17b7   :  { %v1223_v6 = vsub.f32 %v1216_v48, %v1221_v52 }
0x17b9   :  { %v1368_v53 = vmul.f32 -1.442695, %v1223_v6 }
0x17ba   :  { %v1255_v56 = vpop.permute.xlu0 %1254 }
0x17bb   :  { %1648 = vpow2.f32 %v1368_v53 }
0x17be   :  { %v1265_v62 = vpop.permute.xlu0 %1264 }
0x17bf   :  { %v1305_v10 = vpop.permute.xlu1 %1304 }
0x17c0   :  { %v1307_v31 = vsel %vm1302_vm11, %v1305_v10, 0.0 }
0x17c8   :  { %v1649_v54 = vpop.eup %1648 }
0x17c9   :  { %v1227_v55 = vadd.f32 1.0, %v1649_v54 }
0x17cb   :  { %1650 = vrcp.f32 %v1227_v55 }
0x17d8   :  { %v1651_v59 = vpop.eup %1650 }
0x17d9   :  { %v1249_v63 = vsub.f32 %v1651_v59, %v1248_v57  ;;  %v1272_v7 = vmul.f32 %v1651_v59, %v1251_v60  ;;  %1317 = vperm.xlu1 %1579, %v1651_v59   ;;  %v1259_v9 = vsub.f32 %v1651_v59, %v1258_v58  ;;  %v1270_v11 = vmul.f32 %v1651_v59, %v1261_v61 }
0x17db   :  { %v1250_v12 = vmul.f32 %v1249_v63, %v1249_v63  ;;  %v1273_v1 = vmul.f32 %v1272_v7, %v1255_v56  ;;  %v1260_v13 = vmul.f32 %v1259_v9, %v1259_v9  ;;  %v1271_v15 = vmul.f32 %v1270_v11, %v1265_v62 }
0x17dd   :  { %v1252_v16 = vmul.f32 %v1251_v60, %v1250_v12  ;;  %v1262_v17 = vmul.f32 %v1261_v61, %v1260_v13  ;;  %v1274_v18 = vsub.f32 %v1271_v15, %v1273_v1 }
0x17df   :  { %v1257_v5 = vmul.f32 %v1255_v56, %v1252_v16  ;;  %v1267_v19 = vmul.f32 %v1265_v62, %v1262_v17  ;;  %v1276_v21 = vmul.f32 %v1275_v14, %v1274_v18 }
0x17e1   :  { %v1268_v20 = vadd.f32 %v1267_v19, %v1257_v5 }
0x17e3   :  { %v1277_v22 = vadd.f32 %v1276_v21, %v1268_v20 }
0x17e5   :  { %1279 = vrot.lane.b32.xlu0 %v1277_v22, %s1696_s20 }
0x1854   :  { %v1318_v33 = vpop.permute.xlu1 %1317 }
0x1857   :  { %v1280_v23 = vpop.permute.xlu0 %1279 }
0x1858   :  { %v1282_v2 = vsel %vm1231_vm10, %v1280_v23, 0.0 }
0x1859   :  { %1283 = vadd.xlane.f32.xlu0 %v1282_v2 }
0x186f   :  { %1310 = vperm.xlu0 %1578, %v1216_v48  }
0x18e2   :  { %v1284_v24 = vpop.xlane.xlu0 %1283 }
0x18e3   :  { %v1285_v25 = vrot.slane %v1284_v24, 4 }
0x18e5   :  { %v1286_v26 = vadd.f32 %v1285_v25, %v1284_v24 }
0x18e7   :  { %v1287_v27 = vrot.slane %v1286_v26, 2 }
0x18e9   :  { %v1288_v4 = vadd.f32 %v1287_v27, %v1286_v26 }
0x18ea   :  { %v1311_v0 = vpop.permute.xlu0 %1310 }
0x18eb   :  { %v1289_v28 = vrot.slane %v1288_v4, 1  ;;  %v1313_v32 = vsel %vm1308_vm12, %v1311_v0, %v1307_v31 }
0x18ec   :  { %v1320_v35 = vsel %vm1314_vm13, %v1318_v33, %v1313_v32 }
0x18ed   :  { %v1290_v8 = vadd.f32 %v1289_v28, %v1288_v4 }
0x18ef   :  { %1565 = vpush %v1290_v8 }
0x1920   :  { %s1566_s21 = spop %1565 }
0x1921   :  { %s1292_s2 = smul.f32 0.125, %s1566_s21 }
0x1923   :  { %s1295_s5 = sadd.f32 %s1294_s16, %s1292_s2 }
0x1925   :  { %s1299_s23 = ssub.f32 %s1295_s5, %s1298_s17 }
0x1927   :  { %v1322_v34 = vstv %s1299_s23 }
0x1928   :  { %v1323_v36 = vsel %vm1321_vm14, %v1322_v34, %v1320_v35 }
0x1929   :  { %1324 = vst [vmem:[#allocation5] sm:$0xff] %v1323_v36 }
0x192a   :  { %1675 = shalt.err (!%p1672_p9)
}
0x192b   :  { %1334 = dma.vmem_to_hbm [thread:$0]  %s1332_s22, 128, %s2124_s11, [#allocation3]  }
0x192c   :  { %1686 = dma.done.wait [#allocation3], 128  }
0x192d   :  { %1687 = vsyncadd [#allocation3], 4294967168 }
0x192e   :  { %1338 = vsyncpa [#allocation3], 1 }
0x192f   :  { %1339 = vsyncpa [#allocation4], 1 }

</bundles_post_ra>
